<compile_context>
chip_gen: v6e
topology: v6e:2x2x1
jax: 0.10.0
libtpu: 0.0.40
codegen_flags: <defaults>
</compile_context>

<pallas_src>
import functools
import math

import jax
import jax.numpy as jnp
from jax.experimental import pallas as pl
from jax.experimental.pallas import tpu as pltpu

NUM_HEADS = 4
LN_EPS = 1e-5          # PyTorch LayerNorm default
COMPUTE_DTYPE = jnp.bfloat16
_NEG_INF = -1e30


# --------------------------------------------------------------------------
# Kernel
# --------------------------------------------------------------------------
def encoder_layer_kernel(*refs, num_heads, q_tile, fuse_pos, seq_len):
    if fuse_pos:
        (x_ref, pos_ref, wq_ref, wk_ref, wv_ref, wo_ref, w1_ref, w2_ref,
         vec_ref, b1_ref, out_ref, kh_scr, vh_scr) = refs
    else:
        (x_ref, wq_ref, wk_ref, wv_ref, wo_ref, w1_ref, w2_ref,
         vec_ref, b1_ref, out_ref, kh_scr, vh_scr) = refs
        pos_ref = None

    S_pad = x_ref.shape[1]
    D = x_ref.shape[2]
    dh = D // num_heads
    cd = COMPUTE_DTYPE

    i = pl.program_id(1)
    row0 = pl.multiple_of(i * q_tile, q_tile)

    # packed bias / LayerNorm vectors: [9, D] f32
    bq = vec_ref[0:1, :]      # already pre-scaled by 1/sqrt(dh)
    bk = vec_ref[1:2, :]
    bv = vec_ref[2:3, :]
    bo = vec_ref[3:4, :]
    b2 = vec_ref[4:5, :]
    g1 = vec_ref[5:6, :]
    be1 = vec_ref[6:7, :]
    g2 = vec_ref[7:8, :]
    be2 = vec_ref[8:9, :]

    # ---- K/V projection: once per batch element (first q-tile only) -------
    @pl.when(i == 0)
    def _compute_kv():
        x_kv = x_ref[0].astype(jnp.float32)                        # [S, D]
        if fuse_pos:
            x_kv = x_kv + pos_ref[0].astype(jnp.float32)
        x_kv_c = x_kv.astype(cd)
        k = jnp.dot(x_kv_c, wk_ref[...], preferred_element_type=jnp.float32) + bk
        v = jnp.dot(x_kv_c, wv_ref[...], preferred_element_type=jnp.float32) + bv
        kh_scr[...] = k.reshape(S_pad, num_heads, dh).transpose(1, 0, 2).astype(cd)
        vh_scr[...] = v.reshape(S_pad, num_heads, dh).transpose(1, 0, 2).astype(cd)

    # ---- query tile --------------------------------------------------------
    x_q = x_ref[0, pl.ds(row0, q_tile), :].astype(jnp.float32)     # [TQ, D]
    if fuse_pos:
        x_q = x_q + pos_ref[0, pl.ds(row0, q_tile), :].astype(jnp.float32)
    x_q_c = x_q.astype(cd)

    # wq already carries the 1/sqrt(dh) scale.
    q = jnp.dot(x_q_c, wq_ref[...], preferred_element_type=jnp.float32) + bq
    qh = q.reshape(q_tile, num_heads, dh).transpose(1, 0, 2).astype(cd)   # [H,TQ,dh]

    # ---- attention (heads batched on the leading axis) ---------------------
    s = jnp.einsum("hqd,hkd->hqk", qh, kh_scr[...],
                   preferred_element_type=jnp.float32)              # [H,TQ,S]
    if S_pad != seq_len:                                            # mask padded keys
        key_mask = jax.lax.broadcasted_iota(jnp.int32, (1, 1, S_pad), 2) < seq_len
        s = jnp.where(key_mask, s, _NEG_INF)
    s = s - jnp.max(s, axis=-1, keepdims=True)
    p = jnp.exp(s)
    denom = jnp.sum(p, axis=-1, keepdims=True)
    p = p * pl.reciprocal(denom, approx=True)                       # EUP slot

    ctx = jnp.einsum("hqk,hkd->hqd", p.astype(cd), vh_scr[...],
                     preferred_element_type=jnp.float32)            # [H,TQ,dh]
    # wo pre-reshaped host-side to [H, dh, D]; batched matmul + head-sum
    # replaces the transpose+reshape relayout on the critical path.
    attn_h = jnp.einsum("hqd,hde->hqe", ctx.astype(cd), wo_ref[...],
                        preferred_element_type=jnp.float32)         # [H,TQ,D]
    attn = jnp.sum(attn_h, axis=0) + bo                             # [TQ,D]

    # ---- residual + LayerNorm 1 (f32) --------------------------------------
    y = x_q + attn
    mu = jnp.mean(y, axis=-1, keepdims=True)
    var = jnp.mean(jnp.square(y - mu), axis=-1, keepdims=True)
    y = (y - mu) * jax.lax.rsqrt(var + LN_EPS) * g1 + be1

    # ---- feed-forward (bf16 matmuls, f32 accumulation) ----------------------
    h1 = jnp.dot(y.astype(cd), w1_ref[...],
                 preferred_element_type=jnp.float32) + b1_ref[...]
    h1 = jnp.maximum(h1, 0.0)                                       # ReLU
    h2 = jnp.dot(h1.astype(cd), w2_ref[...],
                 preferred_element_type=jnp.float32) + b2

    # ---- residual + LayerNorm 2 (f32) --------------------------------------
    z = y + h2
    mu2 = jnp.mean(z, axis=-1, keepdims=True)
    var2 = jnp.mean(jnp.square(z - mu2), axis=-1, keepdims=True)
    z = (z - mu2) * jax.lax.rsqrt(var2 + LN_EPS) * g2 + be2

    out_ref[0] = z.astype(out_ref.dtype)


# --------------------------------------------------------------------------
# Wrapper / tiling helpers
# --------------------------------------------------------------------------
def _round_up(x, m):
    return ((x + m - 1) // m) * m


def _vmem_capacity_bytes():
    try:
        cap = int(getattr(pltpu.get_tpu_info(), "vmem_capacity_bytes", 0))
        if cap > 0:
            return cap
    except Exception:
        pass
    return 128 * 1024 * 1024        # v5e/v6e default assumption


def _vmem_limit_bytes():
    cap = _vmem_capacity_bytes()
    if cap <= 64 * 1024 * 1024:     # v7x: 64 MiB per TensorCore
        return 48 * 1024 * 1024
    return 96 * 1024 * 1024         # v5e/v6e: 128 MiB physical


def _choose_tiling(S):
    """Return (padded sequence length, q_tile)."""
    if S <= 128:
        return S, S                 # single full-extent tile, no padding needed
    max_tq = 512 if _vmem_capacity_bytes() > 64 * 1024 * 1024 else 256
    S_pad = _round_up(S, 128)
    q_tile = 128
    for t in (512, 256, 128):
        if t <= max_tq and S_pad % t == 0:
            q_tile = t
            break
    return S_pad, q_tile


def _cost_estimate(B, S, D, d_ff, num_heads, fuse_pos):
    flops = int(B * (8 * S * D * D + 4 * S * S * D + 4 * S * D * d_ff))
    transcendentals = int(B * (num_heads * S * S + 4 * S))
    bytes_accessed = int((2 + (1 if fuse_pos else 0)) * B * S * D * 4   # activations
                         + (4 * D * D + 2 * D * d_ff) * 2               # bf16 weights
                         + (9 * D + d_ff) * 4)                          # packed vecs
    return pl.CostEstimate(flops=flops, transcendentals=transcendentals,
                           bytes_accessed=bytes_accessed)


def _prepare_layer(params, num_heads):
    """Fold 1/sqrt(dh) into wq/bq, reshape wo to [H,dh,D], pack [1,D] vectors."""
    D = params["wq"].shape[0]
    dh = D // num_heads
    scale = 1.0 / math.sqrt(dh)
    wq = (params["wq"].astype(jnp.float32) * scale).astype(COMPUTE_DTYPE)

    def row(name):
        return params[name].reshape(D).astype(jnp.float32)

    vecs = jnp.stack([row("bq") * scale, row("bk"), row("bv"), row("bo"),
                      row("b2"), row("g1"), row("beta1"), row("g2"),
                      row("beta2")], axis=0)                         # [9, D] f32
    return dict(
        wq=wq,
        wk=params["wk"].astype(COMPUTE_DTYPE),
        wv=params["wv"].astype(COMPUTE_DTYPE),
        wo3=params["wo"].astype(COMPUTE_DTYPE).reshape(num_heads, dh, D),
        w1=params["w1"].astype(COMPUTE_DTYPE),
        w2=params["w2"].astype(COMPUTE_DTYPE),
        vecs=vecs,
        b1=params["b1"].astype(jnp.float32),
    )


def encoder_layer_pallas(x, params, *, pos=None, num_heads=NUM_HEADS,
                         seq_len=None, q_tile=None):
    B, S_pad, D = x.shape
    if seq_len is None:
        seq_len = S_pad
    if q_tile is None:
        q_tile = S_pad
    assert D % num_heads == 0
    d_ff = params["w1"].shape[1]
    dh = D // num_heads
    n_q = S_pad // q_tile
    fuse_pos = pos is not None

    prep = _prepare_layer(params, num_heads)

    def const_spec(arr):
        # Constant block index + single-buffered: weights are fetched once and
        # stay resident (no double-buffered VMEM waste).
        return pl.BlockSpec(arr.shape, lambda b, i, n=arr.ndim: (0,) * n,
                            pipeline_mode=pl.Buffered(1))

    in_specs = [pl.BlockSpec((1, S_pad, D), lambda b, i: (b, 0, 0))]
    args = [x]
    if fuse_pos:
        in_specs.append(pl.BlockSpec((1, S_pad, D), lambda b, i: (b, 0, 0)))
        args.append(pos)
    for name in ("wq", "wk", "wv", "wo3", "w1", "w2", "vecs", "b1"):
        w = prep[name]
        in_specs.append(const_spec(w))
        args.append(w)

    kernel = functools.partial(encoder_layer_kernel, num_heads=num_heads,
                               q_tile=q_tile, fuse_pos=fuse_pos, seq_len=seq_len)

    return pl.pallas_call(
        kernel,
        out_shape=jax.ShapeDtypeStruct((B, S_pad, D), x.dtype),
        grid_spec=pltpu.PrefetchScalarGridSpec(
            num_scalar_prefetch=0,
            grid=(B, n_q),
            in_specs=in_specs,
            out_specs=pl.BlockSpec((1, q_tile, D), lambda b, i: (b, i, 0)),
            scratch_shapes=[
                pltpu.VMEM((num_heads, S_pad, dh), COMPUTE_DTYPE),   # K (persistent)
                pltpu.VMEM((num_heads, S_pad, dh), COMPUTE_DTYPE),   # V (persistent)
            ]),
        compiler_params=pltpu.CompilerParams(
            # batch axis parallel (megacore split); q-tile axis sequential so
            # the per-batch K/V scratch computed at i==0 is reused.
            dimension_semantics=("parallel", "arbitrary"),
            vmem_limit_bytes=_vmem_limit_bytes()),
        cost_estimate=_cost_estimate(B, S_pad, D, d_ff, num_heads, fuse_pos),
    )(*args)


def transformer_encoder_pallas(src, pos, layer_params, *, num_heads=NUM_HEADS):
    if not layer_params:                       # degenerate: just with_embed
        return src if pos is None else src + pos

    B, S, D = src.shape
    S_pad, q_tile = _choose_tiling(S)
    if S_pad != S:
        padding = ((0, 0), (0, S_pad - S), (0, 0))
        src_p = jnp.pad(src, padding)
        pos_p = jnp.pad(pos, padding) if pos is not None else None
    else:
        src_p, pos_p = src, pos

    output = src_p
    for li, params in enumerate(layer_params):
        layer_pos = pos_p if (li == 0 and pos is not None) else None
        output = encoder_layer_pallas(output, params, pos=layer_pos,
                                      num_heads=num_heads,
                                      seq_len=S, q_tile=q_tile)
    if S_pad != S:
        output = output[:, :S, :]
    return output


# --------------------------------------------------------------------------
# Pure-JAX reference (for sanity check)
# --------------------------------------------------------------------------
def _encoder_layer_ref(x, p, num_heads=NUM_HEADS):
    B, S, D = x.shape
    dh = D // num_heads
    scale = 1.0 / math.sqrt(dh)
    q = x @ p["wq"].astype(jnp.float32) + p["bq"]
    k = x @ p["wk"].astype(jnp.float32) + p["bk"]
    v = x @ p["wv"].astype(jnp.float32) + p["bv"]
    q = q.reshape(B, S, num_heads, dh) * scale
    k = k.reshape(B, S, num_heads, dh)
    v = v.reshape(B, S, num_heads, dh)
    s = jnp.einsum("bqhd,bkhd->bhqk", q, k)
    p_attn = jax.nn.softmax(s, axis=-1)
    o = jnp.einsum("bhqk,bkhd->bqhd", p_attn, v).reshape(B, S, D)
    attn = o @ p["wo"].astype(jnp.float32) + p["bo"]

    def ln(y, g, b):
        mu = jnp.mean(y, axis=-1, keepdims=True)
        var = jnp.mean((y - mu) ** 2, axis=-1, keepdims=True)
        return (y - mu) * jax.lax.rsqrt(var + LN_EPS) * g + b

    y = ln(x + attn, p["g1"], p["beta1"])
    ff = jnp.maximum(y @ p["w1"].astype(jnp.float32) + p["b1"], 0.0)
    ff = ff @ p["w2"].astype(jnp.float32) + p["b2"]
    return ln(y + ff, p["g2"], p["beta2"])


def _encoder_ref(src, pos, layer_params):
    out = src + pos
    for p in layer_params:
        out = _encoder_layer_ref(out, p)
    return out


# --------------------------------------------------------------------------
# Deterministic parameter init (canonical PyTorch-like layout)
# --------------------------------------------------------------------------
def make_layer_params(key, d_model, d_ff):
    ks = jax.random.split(key, 8)
    s = 0.05

    def w(k, shape):
        # Matmul weights stored in bf16 (halved DMA / VMEM; MXU-native operand).
        return (s * jax.random.normal(k, shape, jnp.float32)).astype(jnp.bfloat16)

    return dict(
        wq=w(ks[0], (d_model, d_model)),
        bq=jnp.zeros((1, d_model), jnp.float32),
        wk=w(ks[1], (d_model, d_model)),
        bk=jnp.zeros((1, d_model), jnp.float32),
        wv=w(ks[2], (d_model, d_model)),
        bv=jnp.zeros((1, d_model), jnp.float32),
        wo=w(ks[3], (d_model, d_model)),
        bo=s * jax.random.normal(ks[4], (1, d_model), jnp.float32),
        w1=w(ks[5], (d_model, d_ff)),
        b1=jnp.zeros((1, d_ff), jnp.float32),
        w2=w(ks[6], (d_ff, d_model)),
        b2=s * jax.random.normal(ks[7], (1, d_model), jnp.float32),
        g1=jnp.ones((1, d_model), jnp.float32),
        beta1=jnp.zeros((1, d_model), jnp.float32),
        g2=jnp.ones((1, d_model), jnp.float32),
        beta2=jnp.zeros((1, d_model), jnp.float32),
    )


if __name__ == "__main__":
    B, S, D, FF, NUM_LAYERS = 2, 8, 32, 64, 2

    root = jax.random.PRNGKey(0)
    k_src, k_pos, k_params = jax.random.split(root, 3)
    src = jax.random.normal(k_src, (B, S, D), jnp.float32)
    pos = jax.random.normal(k_pos, (B, S, D), jnp.float32)
    layer_params = [make_layer_params(k, D, FF)
                    for k in jax.random.split(k_params, NUM_LAYERS)]

    out = jax.block_until_ready(transformer_encoder_pallas(src, pos, layer_params))
    ref = _encoder_ref(src, pos, layer_params)
    assert out.shape == (B, S, D)
    err = float(jnp.max(jnp.abs(out - ref)))
    # Tolerance loosened vs. the f32 reference: kernel matmuls use bf16 operands
    # (f32 accumulation) and the softmax uses the EUP approximate reciprocal.
    assert jnp.allclose(out, ref, rtol=5e-2, atol=5e-2), (
        f"mismatch vs reference (small case), max abs err {err}")

    # Second check: non-multiple-of-128 sequence -> exercises S padding, key
    # masking, multi-q-tile grid and the per-batch K/V VMEM scratch reuse.
    B2, S2 = 2, 300
    k2a, k2b, k2c = jax.random.split(jax.random.PRNGKey(1), 3)
    src2 = jax.random.normal(k2a, (B2, S2, D), jnp.float32)
    pos2 = jax.random.normal(k2b, (B2, S2, D), jnp.float32)
    layer_params2 = [make_layer_params(k, D, FF)
                     for k in jax.random.split(k2c, 2)]
    out2 = jax.block_until_ready(
        transformer_encoder_pallas(src2, pos2, layer_params2))
    ref2 = _encoder_ref(src2, pos2, layer_params2)
    assert out2.shape == (B2, S2, D)
    err2 = float(jnp.max(jnp.abs(out2 - ref2)))
    assert jnp.allclose(out2, ref2, rtol=5e-2, atol=5e-2), (
        f"mismatch vs reference (padded case), max abs err {err2}")

    print("KERNEL_OK")
</pallas_src>

<mosaic_0001>
module attributes {stable_mosaic.version = 11 : i64} {
  func.func @encoder_layer_kernel(%arg0: i32, %arg1: i32, %arg2: memref<1x8x32xf32, #tpu.memory_space<vmem>>, %arg3: memref<1x8x32xf32, #tpu.memory_space<vmem>>, %arg4: memref<32x32xbf16, #tpu.memory_space<vmem>>, %arg5: memref<32x32xbf16, #tpu.memory_space<vmem>>, %arg6: memref<32x32xbf16, #tpu.memory_space<vmem>>, %arg7: memref<4x8x32xbf16, #tpu.memory_space<vmem>>, %arg8: memref<32x64xbf16, #tpu.memory_space<vmem>>, %arg9: memref<64x32xbf16, #tpu.memory_space<vmem>>, %arg10: memref<9x32xf32, #tpu.memory_space<vmem>>, %arg11: memref<1x64xf32, #tpu.memory_space<vmem>>, %arg12: memref<1x8x32xf32, #tpu.memory_space<vmem>>, %arg13: memref<4x8x8xbf16, #tpu.memory_space<vmem>>, %arg14: memref<4x8x8xbf16, #tpu.memory_space<vmem>>) attributes {dimension_semantics = [#tpu.dimension_semantics<parallel>, #tpu.dimension_semantics<arbitrary>], iteration_bounds = array<i64: 2, 1>, scalar_prefetch = 0 : i64, scratch_operands = 2 : i64, tpu.core_type = #tpu.core_type<tc>, window_params = [{transform_indices = @transform_0, window_bounds = array<i64: 1, 8, 32>}, {transform_indices = @transform_1, window_bounds = array<i64: 1, 8, 32>}, {pipeline_mode = #tpu.pipeline_mode<synchronous>, transform_indices = @transform_2, window_bounds = array<i64: 32, 32>}, {pipeline_mode = #tpu.pipeline_mode<synchronous>, transform_indices = @transform_3, window_bounds = array<i64: 32, 32>}, {pipeline_mode = #tpu.pipeline_mode<synchronous>, transform_indices = @transform_4, window_bounds = array<i64: 32, 32>}, {pipeline_mode = #tpu.pipeline_mode<synchronous>, transform_indices = @transform_5, window_bounds = array<i64: 4, 8, 32>}, {pipeline_mode = #tpu.pipeline_mode<synchronous>, transform_indices = @transform_6, window_bounds = array<i64: 32, 64>}, {pipeline_mode = #tpu.pipeline_mode<synchronous>, transform_indices = @transform_7, window_bounds = array<i64: 64, 32>}, {pipeline_mode = #tpu.pipeline_mode<synchronous>, transform_indices = @transform_8, window_bounds = array<i64: 9, 32>}, {pipeline_mode = #tpu.pipeline_mode<synchronous>, transform_indices = @transform_9, window_bounds = array<i64: 1, 64>}, {transform_indices = @transform_10, window_bounds = array<i64: 1, 8, 32>}]} {
    %c8_i32 = arith.constant 8 : i32
    %0 = arith.muli %arg1, %c8_i32 : i32
    %1 = tpu.assume_multiple %0, 8 : i32
    %c0 = arith.constant 0 : index
    %c0_0 = arith.constant 0 : index
    %2 = vector.load %arg10[%c0, %c0_0] : memref<9x32xf32, #tpu.memory_space<vmem>>, vector<1x32xf32>
    %c1 = arith.constant 1 : index
    %c0_1 = arith.constant 0 : index
    %3 = vector.load %arg10[%c1, %c0_1] : memref<9x32xf32, #tpu.memory_space<vmem>>, vector<1x32xf32>
    %c2 = arith.constant 2 : index
    %c0_2 = arith.constant 0 : index
    %4 = vector.load %arg10[%c2, %c0_2] : memref<9x32xf32, #tpu.memory_space<vmem>>, vector<1x32xf32>
    %c3 = arith.constant 3 : index
    %c0_3 = arith.constant 0 : index
    %5 = vector.load %arg10[%c3, %c0_3] : memref<9x32xf32, #tpu.memory_space<vmem>>, vector<1x32xf32>
    %c4 = arith.constant 4 : index
    %c0_4 = arith.constant 0 : index
    %6 = vector.load %arg10[%c4, %c0_4] : memref<9x32xf32, #tpu.memory_space<vmem>>, vector<1x32xf32>
    %c5 = arith.constant 5 : index
    %c0_5 = arith.constant 0 : index
    %7 = vector.load %arg10[%c5, %c0_5] : memref<9x32xf32, #tpu.memory_space<vmem>>, vector<1x32xf32>
    %c6 = arith.constant 6 : index
    %c0_6 = arith.constant 0 : index
    %8 = vector.load %arg10[%c6, %c0_6] : memref<9x32xf32, #tpu.memory_space<vmem>>, vector<1x32xf32>
    %c7 = arith.constant 7 : index
    %c0_7 = arith.constant 0 : index
    %9 = vector.load %arg10[%c7, %c0_7] : memref<9x32xf32, #tpu.memory_space<vmem>>, vector<1x32xf32>
    %c8 = arith.constant 8 : index
    %c0_8 = arith.constant 0 : index
    %10 = vector.load %arg10[%c8, %c0_8] : memref<9x32xf32, #tpu.memory_space<vmem>>, vector<1x32xf32>
    %c0_i32 = arith.constant 0 : i32
    %11 = arith.cmpi eq, %arg1, %c0_i32 : i32
    %12 = arith.extui %11 : i1 to i32
    %c0_i32_9 = arith.constant 0 : i32
    %13 = arith.cmpi ne, %12, %c0_i32_9 : i32
    scf.if %13 {
      %c0_53 = arith.constant 0 : index
      %c0_54 = arith.constant 0 : index
      %c0_55 = arith.constant 0 : index
      %112 = vector.load %arg2[%c0_53, %c0_54, %c0_55] : memref<1x8x32xf32, #tpu.memory_space<vmem>>, vector<1x8x32xf32>
      %113 = vector.shape_cast %112 : vector<1x8x32xf32> to vector<8x32xf32>
      %c0_56 = arith.constant 0 : index
      %c0_57 = arith.constant 0 : index
      %c0_58 = arith.constant 0 : index
      %114 = vector.load %arg3[%c0_56, %c0_57, %c0_58] : memref<1x8x32xf32, #tpu.memory_space<vmem>>, vector<1x8x32xf32>
      %115 = vector.shape_cast %114 : vector<1x8x32xf32> to vector<8x32xf32>
      %116 = arith.addf %113, %115 : vector<8x32xf32>
      %117 = arith.truncf %116 : vector<8x32xf32> to vector<8x32xbf16>
      %c0_59 = arith.constant 0 : index
      %c0_60 = arith.constant 0 : index
      %118 = vector.load %arg5[%c0_59, %c0_60] : memref<32x32xbf16, #tpu.memory_space<vmem>>, vector<32x32xbf16>
      %cst_61 = arith.constant dense<0.000000e+00> : vector<8x32xf32>
      %119 = tpu.matmul %117, %118, %cst_61 {dimension_numbers = #tpu.dot_dimension_numbers<[1], [0], [0], [1], [0, 0, 1, 1], [], []>} : vector<8x32xbf16>, vector<32x32xbf16>, vector<8x32xf32> -> vector<8x32xf32>
      %120 = vector.broadcast %3 : vector<1x32xf32> to vector<8x32xf32>
      %121 = arith.addf %119, %120 : vector<8x32xf32>
      %c0_62 = arith.constant 0 : index
      %c0_63 = arith.constant 0 : index
      %122 = vector.load %arg6[%c0_62, %c0_63] : memref<32x32xbf16, #tpu.memory_space<vmem>>, vector<32x32xbf16>
      %cst_64 = arith.constant dense<0.000000e+00> : vector<8x32xf32>
      %123 = tpu.matmul %117, %122, %cst_64 {dimension_numbers = #tpu.dot_dimension_numbers<[1], [0], [0], [1], [0, 0, 1, 1], [], []>} : vector<8x32xbf16>, vector<32x32xbf16>, vector<8x32xf32> -> vector<8x32xf32>
      %124 = vector.broadcast %4 : vector<1x32xf32> to vector<8x32xf32>
      %125 = arith.addf %123, %124 : vector<8x32xf32>
      %126 = vector.shape_cast %121 : vector<8x32xf32> to vector<8x4x8xf32>
      %127 = tpu.transpose %126, [1, 0, 2] : vector<8x4x8xf32> -> vector<4x8x8xf32>
      %128 = arith.truncf %127 : vector<4x8x8xf32> to vector<4x8x8xbf16>
      %c0_65 = arith.constant 0 : index
      %c0_66 = arith.constant 0 : index
      %c0_67 = arith.constant 0 : index
      %129 = vector.load %arg13[%c0_65, %c0_66, %c0_67] : memref<4x8x8xbf16, #tpu.memory_space<vmem>>, vector<4x8x8xbf16>
      tpu.vector_store %arg13[%c0_65, %c0_66, %c0_67], %128 {strides = array<i32>} : memref<4x8x8xbf16, #tpu.memory_space<vmem>>, vector<4x8x8xbf16>,
      %130 = vector.shape_cast %125 : vector<8x32xf32> to vector<8x4x8xf32>
      %131 = tpu.transpose %130, [1, 0, 2] : vector<8x4x8xf32> -> vector<4x8x8xf32>
      %132 = arith.truncf %131 : vector<4x8x8xf32> to vector<4x8x8xbf16>
      %c0_68 = arith.constant 0 : index
      %c0_69 = arith.constant 0 : index
      %c0_70 = arith.constant 0 : index
      %133 = vector.load %arg14[%c0_68, %c0_69, %c0_70] : memref<4x8x8xbf16, #tpu.memory_space<vmem>>, vector<4x8x8xbf16>
      tpu.vector_store %arg14[%c0_68, %c0_69, %c0_70], %132 {strides = array<i32>} : memref<4x8x8xbf16, #tpu.memory_space<vmem>>, vector<4x8x8xbf16>,
    } else {
    }
    %c0_10 = arith.constant 0 : index
    %14 = arith.index_cast %1 : i32 to index
    %c0_11 = arith.constant 0 : index
    %15 = vector.load %arg2[%c0_10, %14, %c0_11] : memref<1x8x32xf32, #tpu.memory_space<vmem>>, vector<1x8x32xf32>
    %16 = vector.shape_cast %15 : vector<1x8x32xf32> to vector<8x32xf32>
    %c0_12 = arith.constant 0 : index
    %17 = arith.index_cast %1 : i32 to index
    %c0_13 = arith.constant 0 : index
    %18 = vector.load %arg3[%c0_12, %17, %c0_13] : memref<1x8x32xf32, #tpu.memory_space<vmem>>, vector<1x8x32xf32>
    %19 = vector.shape_cast %18 : vector<1x8x32xf32> to vector<8x32xf32>
    %20 = arith.addf %16, %19 : vector<8x32xf32>
    %21 = arith.truncf %20 : vector<8x32xf32> to vector<8x32xbf16>
    %c0_14 = arith.constant 0 : index
    %c0_15 = arith.constant 0 : index
    %22 = vector.load %arg4[%c0_14, %c0_15] : memref<32x32xbf16, #tpu.memory_space<vmem>>, vector<32x32xbf16>
    %cst = arith.constant dense<0.000000e+00> : vector<8x32xf32>
    %23 = tpu.matmul %21, %22, %cst {dimension_numbers = #tpu.dot_dimension_numbers<[1], [0], [0], [1], [0, 0, 1, 1], [], []>} : vector<8x32xbf16>, vector<32x32xbf16>, vector<8x32xf32> -> vector<8x32xf32>
    %24 = vector.broadcast %2 : vector<1x32xf32> to vector<8x32xf32>
    %25 = arith.addf %23, %24 : vector<8x32xf32>
    %26 = vector.shape_cast %25 : vector<8x32xf32> to vector<8x4x8xf32>
    %27 = tpu.transpose %26, [1, 0, 2] : vector<8x4x8xf32> -> vector<4x8x8xf32>
    %28 = arith.truncf %27 : vector<4x8x8xf32> to vector<4x8x8xbf16>
    %c0_16 = arith.constant 0 : index
    %c0_17 = arith.constant 0 : index
    %c0_18 = arith.constant 0 : index
    %29 = vector.load %arg13[%c0_16, %c0_17, %c0_18] : memref<4x8x8xbf16, #tpu.memory_space<vmem>>, vector<4x8x8xbf16>
    "tpu.trace_start"() <{level = 10 : i32, message = "hqd,hkd->hqk"}> : () -> ()
    %cst_19 = arith.constant dense<0.000000e+00> : vector<4x8x8xf32>
    %30 = tpu.matmul %28, %29, %cst_19 {dimension_numbers = #tpu.dot_dimension_numbers<[2], [2], [1], [1], [0, 0, 0, 1, 1, 1], [0], [0]>} : vector<4x8x8xbf16>, vector<4x8x8xbf16>, vector<4x8x8xf32> -> vector<4x8x8xf32>
    "tpu.trace_stop"() : () -> ()
    %cst_20 = arith.constant dense<0xFF800000> : vector<4x8xf32>
    %31 = vector.multi_reduction <maximumf>, %30, %cst_20 [2] : vector<4x8x8xf32> to vector<4x8xf32>
    %32 = vector.shape_cast %31 : vector<4x8xf32> to vector<4x8x1xf32>
    %33 = vector.broadcast %32 : vector<4x8x1xf32> to vector<4x8x8xf32>
    %34 = arith.subf %30, %33 : vector<4x8x8xf32>
    %35 = math.exp %34 : vector<4x8x8xf32>
    %cst_21 = arith.constant dense<0.000000e+00> : vector<4x8xf32>
    %36 = vector.multi_reduction <add>, %35, %cst_21 [2] : vector<4x8x8xf32> to vector<4x8xf32>
    %37 = vector.shape_cast %36 : vector<4x8xf32> to vector<4x8x1xf32>
    %38 = tpu.reciprocal %37 {approx = true} : vector<4x8x1xf32> -> vector<4x8x1xf32>
    %39 = vector.broadcast %38 : vector<4x8x1xf32> to vector<4x8x8xf32>
    %40 = arith.mulf %35, %39 : vector<4x8x8xf32>
    %41 = arith.truncf %40 : vector<4x8x8xf32> to vector<4x8x8xbf16>
    %c0_22 = arith.constant 0 : index
    %c0_23 = arith.constant 0 : index
    %c0_24 = arith.constant 0 : index
    %42 = vector.load %arg14[%c0_22, %c0_23, %c0_24] : memref<4x8x8xbf16, #tpu.memory_space<vmem>>, vector<4x8x8xbf16>
    "tpu.trace_start"() <{level = 10 : i32, message = "hqk,hkd->hqd"}> : () -> ()
    %cst_25 = arith.constant dense<0.000000e+00> : vector<4x8x8xf32>
    %43 = tpu.matmul %41, %42, %cst_25 {dimension_numbers = #tpu.dot_dimension_numbers<[2], [1], [1], [2], [0, 0, 0, 1, 1, 2], [0], [0]>} : vector<4x8x8xbf16>, vector<4x8x8xbf16>, vector<4x8x8xf32> -> vector<4x8x8xf32>
    "tpu.trace_stop"() : () -> ()
    %44 = arith.truncf %43 : vector<4x8x8xf32> to vector<4x8x8xbf16>
    %c0_26 = arith.constant 0 : index
    %c0_27 = arith.constant 0 : index
    %c0_28 = arith.constant 0 : index
    %45 = vector.load %arg7[%c0_26, %c0_27, %c0_28] : memref<4x8x32xbf16, #tpu.memory_space<vmem>>, vector<4x8x32xbf16>
    "tpu.trace_start"() <{level = 10 : i32, message = "hqd,hde->hqe"}> : () -> ()
    %cst_29 = arith.constant dense<0.000000e+00> : vector<4x8x32xf32>
    %46 = tpu.matmul %44, %45, %cst_29 {dimension_numbers = #tpu.dot_dimension_numbers<[2], [1], [1], [2], [0, 0, 0, 1, 1, 2], [0], [0]>} : vector<4x8x8xbf16>, vector<4x8x32xbf16>, vector<4x8x32xf32> -> vector<4x8x32xf32>
    "tpu.trace_stop"() : () -> ()
    %cst_30 = arith.constant dense<0.000000e+00> : vector<8x32xf32>
    %47 = vector.multi_reduction <add>, %46, %cst_30 [0] : vector<4x8x32xf32> to vector<8x32xf32>
    %48 = vector.broadcast %5 : vector<1x32xf32> to vector<8x32xf32>
    %49 = arith.addf %47, %48 : vector<8x32xf32>
    %50 = arith.addf %20, %49 : vector<8x32xf32>
    %cst_31 = arith.constant dense<0.000000e+00> : vector<8xf32>
    %51 = vector.multi_reduction <add>, %50, %cst_31 [1] : vector<8x32xf32> to vector<8xf32>
    %52 = vector.shape_cast %51 : vector<8xf32> to vector<8x1xf32>
    %cst_32 = arith.constant 3.200000e+01 : f32
    %53 = vector.broadcast %cst_32 : f32 to vector<8x1xf32>
    %54 = arith.divf %52, %53 : vector<8x1xf32>
    %55 = vector.broadcast %54 : vector<8x1xf32> to vector<8x32xf32>
    %56 = arith.subf %50, %55 : vector<8x32xf32>
    %57 = arith.mulf %56, %56 : vector<8x32xf32>
    %cst_33 = arith.constant dense<0.000000e+00> : vector<8xf32>
    %58 = vector.multi_reduction <add>, %57, %cst_33 [1] : vector<8x32xf32> to vector<8xf32>
    %59 = vector.shape_cast %58 : vector<8xf32> to vector<8x1xf32>
    %cst_34 = arith.constant 3.200000e+01 : f32
    %60 = vector.broadcast %cst_34 : f32 to vector<8x1xf32>
    %61 = arith.divf %59, %60 : vector<8x1xf32>
    %62 = vector.broadcast %54 : vector<8x1xf32> to vector<8x32xf32>
    %63 = arith.subf %50, %62 : vector<8x32xf32>
    %cst_35 = arith.constant 9.99999974E-6 : f32
    %64 = vector.broadcast %cst_35 : f32 to vector<8x1xf32>
    %65 = arith.addf %61, %64 : vector<8x1xf32>
    %66 = math.rsqrt %65 : vector<8x1xf32>
    %67 = vector.broadcast %66 : vector<8x1xf32> to vector<8x32xf32>
    %68 = arith.mulf %63, %67 : vector<8x32xf32>
    %69 = vector.broadcast %7 : vector<1x32xf32> to vector<8x32xf32>
    %70 = arith.mulf %68, %69 : vector<8x32xf32>
    %71 = vector.broadcast %8 : vector<1x32xf32> to vector<8x32xf32>
    %72 = arith.addf %70, %71 : vector<8x32xf32>
    %73 = arith.truncf %72 : vector<8x32xf32> to vector<8x32xbf16>
    %c0_36 = arith.constant 0 : index
    %c0_37 = arith.constant 0 : index
    %74 = vector.load %arg8[%c0_36, %c0_37] : memref<32x64xbf16, #tpu.memory_space<vmem>>, vector<32x64xbf16>
    %cst_38 = arith.constant dense<0.000000e+00> : vector<8x64xf32>
    %75 = tpu.matmul %73, %74, %cst_38 {dimension_numbers = #tpu.dot_dimension_numbers<[1], [0], [0], [1], [0, 0, 1, 1], [], []>} : vector<8x32xbf16>, vector<32x64xbf16>, vector<8x64xf32> -> vector<8x64xf32>
    %c0_39 = arith.constant 0 : index
    %c0_40 = arith.constant 0 : index
    %76 = vector.load %arg11[%c0_39, %c0_40] : memref<1x64xf32, #tpu.memory_space<vmem>>, vector<1x64xf32>
    %77 = vector.broadcast %76 : vector<1x64xf32> to vector<8x64xf32>
    %78 = arith.addf %75, %77 : vector<8x64xf32>
    %cst_41 = arith.constant 0.000000e+00 : f32
    %79 = vector.broadcast %cst_41 : f32 to vector<8x64xf32>
    %80 = arith.maximumf %78, %79 : vector<8x64xf32>
    %81 = arith.truncf %80 : vector<8x64xf32> to vector<8x64xbf16>
    %c0_42 = arith.constant 0 : index
    %c0_43 = arith.constant 0 : index
    %82 = vector.load %arg9[%c0_42, %c0_43] : memref<64x32xbf16, #tpu.memory_space<vmem>>, vector<64x32xbf16>
    %cst_44 = arith.constant dense<0.000000e+00> : vector<8x32xf32>
    %83 = tpu.matmul %81, %82, %cst_44 {dimension_numbers = #tpu.dot_dimension_numbers<[1], [0], [0], [1], [0, 0, 1, 1], [], []>} : vector<8x64xbf16>, vector<64x32xbf16>, vector<8x32xf32> -> vector<8x32xf32>
    %84 = vector.broadcast %6 : vector<1x32xf32> to vector<8x32xf32>
    %85 = arith.addf %83, %84 : vector<8x32xf32>
    %86 = arith.addf %72, %85 : vector<8x32xf32>
    %cst_45 = arith.constant dense<0.000000e+00> : vector<8xf32>
    %87 = vector.multi_reduction <add>, %86, %cst_45 [1] : vector<8x32xf32> to vector<8xf32>
    %88 = vector.shape_cast %87 : vector<8xf32> to vector<8x1xf32>
    %cst_46 = arith.constant 3.200000e+01 : f32
    %89 = vector.broadcast %cst_46 : f32 to vector<8x1xf32>
    %90 = arith.divf %88, %89 : vector<8x1xf32>
    %91 = vector.broadcast %90 : vector<8x1xf32> to vector<8x32xf32>
    %92 = arith.subf %86, %91 : vector<8x32xf32>
    %93 = arith.mulf %92, %92 : vector<8x32xf32>
    %cst_47 = arith.constant dense<0.000000e+00> : vector<8xf32>
    %94 = vector.multi_reduction <add>, %93, %cst_47 [1] : vector<8x32xf32> to vector<8xf32>
    %95 = vector.shape_cast %94 : vector<8xf32> to vector<8x1xf32>
    %cst_48 = arith.constant 3.200000e+01 : f32
    %96 = vector.broadcast %cst_48 : f32 to vector<8x1xf32>
    %97 = arith.divf %95, %96 : vector<8x1xf32>
    %98 = vector.broadcast %90 : vector<8x1xf32> to vector<8x32xf32>
    %99 = arith.subf %86, %98 : vector<8x32xf32>
    %cst_49 = arith.constant 9.99999974E-6 : f32
    %100 = vector.broadcast %cst_49 : f32 to vector<8x1xf32>
    %101 = arith.addf %97, %100 : vector<8x1xf32>
    %102 = math.rsqrt %101 : vector<8x1xf32>
    %103 = vector.broadcast %102 : vector<8x1xf32> to vector<8x32xf32>
    %104 = arith.mulf %99, %103 : vector<8x32xf32>
    %105 = vector.broadcast %9 : vector<1x32xf32> to vector<8x32xf32>
    %106 = arith.mulf %104, %105 : vector<8x32xf32>
    %107 = vector.broadcast %10 : vector<1x32xf32> to vector<8x32xf32>
    %108 = arith.addf %106, %107 : vector<8x32xf32>
    %c0_50 = arith.constant 0 : index
    %c0_51 = arith.constant 0 : index
    %c0_52 = arith.constant 0 : index
    %109 = vector.load %arg12[%c0_50, %c0_51, %c0_52] : memref<1x8x32xf32, #tpu.memory_space<vmem>>, vector<1x8x32xf32>
    %110 = vector.shape_cast %109 : vector<1x8x32xf32> to vector<8x32xf32>
    %111 = vector.shape_cast %108 : vector<8x32xf32> to vector<1x8x32xf32>
    tpu.vector_store %arg12[%c0_50, %c0_51, %c0_52], %111 {strides = array<i32>} : memref<1x8x32xf32, #tpu.memory_space<vmem>>, vector<1x8x32xf32>,
    return
  }
  func.func @transform_0(%arg0: i32, %arg1: i32) -> (i32, i32, i32) {
    %c0_i32 = arith.constant 0 : i32
    %c0_i32_0 = arith.constant 0 : i32
    %c0_i32_1 = arith.constant 0 : i32
    return %arg0, %c0_i32, %c0_i32_0 : i32, i32, i32
  }
  func.func @transform_1(%arg0: i32, %arg1: i32) -> (i32, i32, i32) {
    %c0_i32 = arith.constant 0 : i32
    %c0_i32_0 = arith.constant 0 : i32
    %c0_i32_1 = arith.constant 0 : i32
    return %arg0, %c0_i32, %c0_i32_0 : i32, i32, i32
  }
  func.func @transform_2(%arg0: i32, %arg1: i32) -> (i32, i32) {
    %c0_i32 = arith.constant 0 : i32
    %c0_i32_0 = arith.constant 0 : i32
    %c0_i32_1 = arith.constant 0 : i32
    return %c0_i32, %c0_i32_0 : i32, i32
  }
  func.func @transform_3(%arg0: i32, %arg1: i32) -> (i32, i32) {
    %c0_i32 = arith.constant 0 : i32
    %c0_i32_0 = arith.constant 0 : i32
    %c0_i32_1 = arith.constant 0 : i32
    return %c0_i32, %c0_i32_0 : i32, i32
  }
  func.func @transform_4(%arg0: i32, %arg1: i32) -> (i32, i32) {
    %c0_i32 = arith.constant 0 : i32
    %c0_i32_0 = arith.constant 0 : i32
    %c0_i32_1 = arith.constant 0 : i32
    return %c0_i32, %c0_i32_0 : i32, i32
  }
  func.func @transform_5(%arg0: i32, %arg1: i32) -> (i32, i32, i32) {
    %c0_i32 = arith.constant 0 : i32
    %c0_i32_0 = arith.constant 0 : i32
    %c0_i32_1 = arith.constant 0 : i32
    %c0_i32_2 = arith.constant 0 : i32
    return %c0_i32, %c0_i32_0, %c0_i32_1 : i32, i32, i32
  }
  func.func @transform_6(%arg0: i32, %arg1: i32) -> (i32, i32) {
    %c0_i32 = arith.constant 0 : i32
    %c0_i32_0 = arith.constant 0 : i32
    %c0_i32_1 = arith.constant 0 : i32
    return %c0_i32, %c0_i32_0 : i32, i32
  }
  func.func @transform_7(%arg0: i32, %arg1: i32) -> (i32, i32) {
    %c0_i32 = arith.constant 0 : i32
    %c0_i32_0 = arith.constant 0 : i32
    %c0_i32_1 = arith.constant 0 : i32
    return %c0_i32, %c0_i32_0 : i32, i32
  }
  func.func @transform_8(%arg0: i32, %arg1: i32) -> (i32, i32) {
    %c0_i32 = arith.constant 0 : i32
    %c0_i32_0 = arith.constant 0 : i32
    %c0_i32_1 = arith.constant 0 : i32
    return %c0_i32, %c0_i32_0 : i32, i32
  }
  func.func @transform_9(%arg0: i32, %arg1: i32) -> (i32, i32) {
    %c0_i32 = arith.constant 0 : i32
    %c0_i32_0 = arith.constant 0 : i32
    %c0_i32_1 = arith.constant 0 : i32
    return %c0_i32, %c0_i32_0 : i32, i32
  }
  func.func @transform_10(%arg0: i32, %arg1: i32) -> (i32, i32, i32) {
    %c0_i32 = arith.constant 0 : i32
    %c0_i32_0 = arith.constant 0 : i32
    return %arg0, %arg1, %c0_i32 : i32, i32, i32
  }
}

</mosaic_0001>

<bundles_post_ra>
// kernel: tpu_custom_call.1
= control target key start
LH: loop header
LB: loop body
LE: loop exit
PB: predicated region body
PF: predicated region fallthrough
CT: control target
= control target key end

     0   :  { %s3169_s0 = inlined_call_operand.vmem [shape: f32[2,8,32], index: 0, kind: input, shape index: {}]   ;;  %s3170_s1 = inlined_call_operand.vmem [shape: f32[2,8,32], index: 1, kind: input, shape index: {}]   ;;  %s3171_s2 = inlined_call_operand.vmem [shape: bf16[32,32], index: 2, kind: input, shape index: {}]   ;;  %s3172_s3 = inlined_call_operand.hbm [shape: bf16[32,32], index: 3, kind: input, shape index: {}]   ;;  %s3173_s4 = inlined_call_operand.hbm [shape: bf16[32,32], index: 4, kind: input, shape index: {}]   ;;  %s3174_s5 = inlined_call_operand.hbm [shape: bf16[4,8,32], index: 5, kind: input, shape index: {}]   ;;  %s3175_s6 = inlined_call_operand.hbm [shape: bf16[32,64], index: 6, kind: input, shape index: {}]   ;;  %s3176_s7 = inlined_call_operand.vmem [shape: bf16[64,32], index: 7, kind: input, shape index: {}]   ;;  %s3177_s8 = inlined_call_operand.hbm [shape: f32[9,32], index: 8, kind: input, shape index: {}]   ;;  %s3178_s9 = inlined_call_operand.vmem [shape: f32[1,64], index: 9, kind: input, shape index: {}]   ;;  %s3179_s10 = inlined_call_operand.hbm [shape: f32[2,8,32], index: 10, kind: output, shape index: {}]  }
   0x1   :  { %3183 = sst [smem:[#allocation22_spill]] %s3173_s4 }
   0x2   :  { %15 = vsyncpa [#allocation5], 0 }
   0x3   :  { %16 = vsyncpa [#allocation8], 0 }
   0x4   :  { %17 = vsyncpa [#allocation11], 0 }
   0x5   :  { %18 = vsyncpa [#allocation6], 0 }
   0x6   :  { %20 = vsyncpa [#allocation6 + $0x1], 0  ;;  %s2774_s13 = smov 0   ;;  %s2776_s14 = smov 0  }
   0x7   :  { %s2778_s15 = smov 0   ;;  %s2780_s16 = smov 0  }
   0x8   :  { %s2782_s17 = smov 0   ;;  %s2784_s18 = smov 0  }
   0x9 LB: > { %3184 = sst [smem:[#allocation18_spill]] %s2688_s15  ;;  %s2109_s19 = sadd.s32 4294967295, %s2700_s18   ;;  %s2700_s18 = sphi %s2784_s18, %s26_s18   ;;  %s2696_s17 = sphi %s2782_s17, %s3199_s17   ;;  %s2692_s16 = sphi %s2780_s16, %s3198_s16   ;;  %s2688_s15 = sphi %s2778_s15, %s3197_s15   ;;  %s2684_s14 = sphi %s2776_s14, %s3201_s14   ;;  %s2680_s13 = sphi %s2774_s13, %s3200_s13  }
   0xa   : > { %3185 = sst [smem:[#allocation19_spill]] %s2696_s17  ;;  %s2110_s20 = sadd.s32 4294967294, %s2700_s18  }
   0xb   : > { %s38_s21 = sadd.s32 1, %s2696_s17  ;;  %s267_s22 = sadd.s32 1, %s2688_s15 }
   0xc   : > { %p40_p0 = scmp.ge.s32.totalorder %s38_s21, 2  ;;  %p277_p1 = scmp.ne.s32.totalorder %s2688_s15, %s2684_s14 }
   0xd   : > { %p278_p2 = scmp.eq.s32.totalorder %s2109_s19, 1  ;;  %p283_p3 = scmp.ne.s32.totalorder %s2684_s14, %s2680_s13 }
   0xe   : > { %s3203_s21 = smov (%p40_p0, %s38_s21), 0  ;;  %p284_p5 = scmp.eq.s32.totalorder %s2110_s20, 1 }
   0xf   : > { %3186 = sst [smem:[#allocation20_spill]] %s3203_s21  ;;  %p2814_p4 = por %p278_p2, %p277_p1 }
  0x10   : > { %s262_s24 = ssub.s32 %s2696_s17, %s3203_s21  ;;  %p2111_p6 = scmp.ge.s32.totalorder %s2700_s18, 1 }
  0x11   : > { %p265_p7 = scmp.eq.s32.totalorder %s262_s24, 0  ;;  %p2821_p8 = por %p284_p5, %p283_p3 }
  0x12   : > { %p291_p9 = scmp.lt.s32.totalorder %s2700_s18, 3  ;;  %p2833_p11 = scmp.eq.s32.totalorder %s2109_s19, 0 }
  0x13   : > { %s3188_s25 = scalar_select %p2821_p8, 1, 0 }
  0x14   : > { %s2827_s26 = scalar_select %p265_p7, %s2688_s15, %s267_s22  }
  0x15   : > { %p2829_p10 = pnand %p2111_p6, %p291_p9  ;;  %s2702_s29 = smov [#allocation7]  }
  0x16   : > { %3189 = sst [smem:[#allocation21_spill]] %s2827_s26  ;;  %s319_s30 = sshll.u32 %s2702_s29, 4  ;;  %s320_s30 = int_to_ptr.vmem [resolvable:$true] %s319_s30 }
  0x17   : > { %p2355_p12 = pneg %p2829_p10  ;;  %s2703_s12 = smov [#allocation10]  }
  0x18   : > { %s345_s20 = sshll.u32 %s2703_s12, 4  ;;  %s2493_s22 = scalar_lea.vmem %s320_s30, 256  ;;  %s346_s20 = int_to_ptr.vmem [resolvable:$true] %s345_s20 }
  0x19   : > { %p2841_p13 = pnand %p2833_p11, %p2355_p12  ;;  %p2494_p1 = scmp.ne.s32.totalorder %s320_s30, %s2493_s22 }
  0x1a   : > { %p2501_p5 = scmp.lt.s32.totalorder %s320_s30, %s320_s30  ;;  %p2502_p6 = scmp.lt.s32.totalorder %s2493_s22, %s2493_s22 }
  0x1b   : > { %p2847_p0 = pneg %p2841_p13 }
  0x1c   : > { %p2503_p7 = por %p2502_p6, %p2501_p5 }
  0x1d   : > { %p2496_p2 = pnand %p2494_p1, %p2847_p0 }
  0x1f   : > { %p2497_p3 = pneg %p2496_p2 }
  0x21   : > { %p2504_p9 = pnand %p2503_p7, %p2497_p3 }
  0x23   : > { %2507 = shalt.err (!%p2504_p9)
}
  0x24   : > { %s2704_s24 = smov 64   ;;  %s2705_s29 = smov 4  }
  0x25   : > { %s3194_s4 = sld [smem:[#allocation22_spill]]  ;;  %s2519_s17 = scalar_lea.vmem %s346_s20, 256 }
  0x26   : > { %p2520_p12 = scmp.ne.s32.totalorder %s346_s20, %s2519_s17  ;;  %p2527_p5 = scmp.lt.s32.totalorder %s346_s20, %s346_s20 }
  0x27   : > { %p2528_p3 = scmp.lt.s32.totalorder %s2519_s17, %s2519_s17 }
  0x28   : > { %p2522_p1 = pnand %p2520_p12, %p2847_p0 }
  0x29   : > { %p2529_p6 = por %p2528_p3, %p2527_p5 }
  0x2a   : > { %p2523_p2 = pneg %p2522_p1 }
  0x2b   : > { %2361 = dma.hbm_to_vmem [thread:$0]  (!%p2841_p13), %s3194_s4, 256, %s320_s30, [#allocation8], %s2704_s24, %s2704_s24, %s2705_s29  }
  0x2c   : > { %p2530_p7 = pnand %p2529_p6, %p2523_p2 }
  0x2e   : > { %2533 = shalt.err (!%p2530_p7)
}
  0x2f   : > { %2367 = dma.hbm_to_vmem [thread:$0]  (!%p2841_p13), %s3175_s6, 256, %s346_s20, [#allocation11], %s2704_s24, %s2704_s24, %s2705_s29  }
  0x30   : > { %s2706_s21 = smov [#allocation4]   ;;  %s2707_s12 = smov [#allocation9]  }
  0x31   : > { %s306_s30 = sshll.u32 %s2706_s21, 4  ;;  %s332_s4 = sshll.u32 %s2707_s12, 4  ;;  %s307_s30 = int_to_ptr.vmem [resolvable:$true] %s306_s30  ;;  %s333_s4 = int_to_ptr.vmem [resolvable:$true] %s332_s4 }
  0x32   : > { %s2545_s15 = scalar_lea.vmem %s307_s30, 256  ;;  %p2553_p2 = scmp.lt.s32.totalorder %s307_s30, %s307_s30 }
  0x33   : > { %p2546_p9 = scmp.ne.s32.totalorder %s307_s30, %s2545_s15  ;;  %p2554_p5 = scmp.lt.s32.totalorder %s2545_s15, %s2545_s15 }
  0x35   : > { %p2548_p12 = pnand %p2546_p9, %p2847_p0  ;;  %p2555_p3 = por %p2554_p5, %p2553_p2 }
  0x37   : > { %p2549_p1 = pneg %p2548_p12 }
  0x39   : > { %p2556_p6 = pnand %p2555_p3, %p2549_p1 }
  0x3b   : > { %2559 = shalt.err (!%p2556_p6)
}
  0x3c   : > { %2358 = dma.hbm_to_vmem [thread:$0]  (!%p2841_p13), %s3172_s3, 256, %s307_s30, [#allocation5], %s2704_s24, %s2704_s24, %s2705_s29  }
  0x3d   : > { %s2571_s20 = scalar_lea.vmem %s333_s4, 256  ;;  %p2579_p8 = scmp.lt.s32.totalorder %s333_s4, %s333_s4 }
  0x3e   : > { %p2572_p7 = scmp.ne.s32.totalorder %s333_s4, %s2571_s20  ;;  %p2580_p2 = scmp.lt.s32.totalorder %s2571_s20, %s2571_s20 }
  0x40   : > { %p2574_p9 = pnand %p2572_p7, %p2847_p0  ;;  %p2581_p1 = por %p2580_p2, %p2579_p8 }
  0x42   : > { %p2575_p12 = pneg %p2574_p9 }
  0x44   : > { %p2582_p5 = pnand %p2581_p1, %p2575_p12 }
  0x46   : > { %2585 = shalt.err (!%p2582_p5)
}
  0x47   : > { %2364 = dma.hbm_to_vmem [thread:$0]  (!%p2841_p13), %s3174_s5, 256, %s333_s4, [#allocation8], %s2704_s24, %s2704_s24, %s2705_s29  }
  0x48   : > { %s2708_s21 = smov [#allocation12]  }
  0x49   : > { %s361_s30 = sshll.u32 %s2708_s21, 4  ;;  %s362_s30 = int_to_ptr.vmem [resolvable:$true] %s361_s30 }
  0x4a   : > { %s2597_s12 = scalar_lea.vmem %s362_s30, 256  ;;  %p2605_p7 = scmp.lt.s32.totalorder %s362_s30, %s362_s30 }
  0x4b   : > { %p2598_p3 = scmp.ne.s32.totalorder %s362_s30, %s2597_s12  ;;  %p2606_p9 = scmp.lt.s32.totalorder %s2597_s12, %s2597_s12 }
  0x4d   : > { %p2600_p6 = pnand %p2598_p3, %p2847_p0  ;;  %p2607_p12 = por %p2606_p9, %p2605_p7 }
  0x4f   : > { %p2601_p8 = pneg %p2600_p6 }
  0x51   : > { %p2608_p2 = pnand %p2607_p12, %p2601_p8 }
  0x53   : > { %2611 = shalt.err (!%p2608_p2)
}
  0x54   : > { %s2709_s17 = smov 128   ;;  %s2710_s26 = smov 8  }
  0x55   : > { %2370 = dma.hbm_to_vmem [thread:$0]  (!%p2841_p13), %s3177_s8, 256, %s362_s30, [#allocation11], %s2709_s17, %s2709_s17, %s2710_s26  }
  0x56   : > { %394 = sbr.rel (%p2829_p10) target bundleno = 2400 (0x960), region = 60 }
  0x5b   : > { %2663 = dma.done.wait (%p2833_p11), [#allocation5], 256  }
  0x5c   : > { %2665 = vsyncadd (%p2833_p11), [#allocation5], 4294967040 }
  0x5d   : > { %2667 = dma.done.wait (%p2833_p11), [#allocation8], 512  }
  0x5e   : > { %2669 = vsyncadd (%p2833_p11), [#allocation8], 4294966784 }
  0x5f   : > { %2671 = dma.done.wait (%p2833_p11), [#allocation11], 512  }
  0x60   : > { %2673 = vsyncadd (%p2833_p11), [#allocation11], 4294966784  ;;  %p451_p10 = scmp.lt.s32.totalorder %s2692_s16, 1  ;;  %v2711_v0 = vmov 0.0   ;;  %vm2712_vm0 = vmmov 0   ;;  %v2450_v1 = vld [vmem:[#allocation4 + $0x8] sm:$0xff]   ;;  %v617_v25 = vlaneseq }
  0x61   : > { %2217 = vmatprep.subr.bf16.mxu1 %v2711_v0  ;;  %2233 = vmatprep.subr.bf16.mxu0 %v2711_v0  ;;  %v2451_v2 = vld [vmem:[#allocation4] sm:$0xff]   ;;  %v2452_v3 = vld [vmem:[%s3171_s2 + $0x8] sm:$0xff]   ;;  %vm498_vm1 = vcmask 261120   ;;  %s2713_s26 = smov 104   ;;  %s2714_s20 = smov 120   ;;  %v2454_v21 = vld [vmem:[#allocation7 + $0x8] sm:$0xff]  }
  0x62   : > { %2221 = vmatprep.mubr.msk.bf16.mxu1 %vm2712_vm0, %v2711_v0  ;;  %s452_s4 = scalar_select %p451_p10, %s2692_s16, 1  ;;  %2237 = vmatprep.mubr.msk.bf16.mxu0 %vm2712_vm0, %v2711_v0  ;;  %v2453_v7 = vld [vmem:[%s3171_s2] sm:$0xff]   ;;  %v2455_v22 = vld [vmem:[#allocation7] sm:$0xff]   ;;  %v2716_v23 = vmov 1983009808   ;;  %v618_v29 = vshrl.u32 %v617_v25, 7 }
  0x63   : > { %2218 = vmatpush3.bf16.msra.mxu1 %v2450_v1  ;;  %2234 = vmatpush3.bf16.msra.mxu0 %v2452_v3  ;;  %v2127_v9 = vld [vmem:[#allocation12 + $0x1] ss:$0 sm:$0xff]  ;;  %v2139_v11 = vld [vmem:[#allocation12] ss:$0 sm:$0xff]  ;;  %s2715_s15 = smov 112   ;;  %v615_v24 = vunpack.c.l.s4 %v2716_v23  ;;  %vm752_vm2 = vcmask 60416  }
  0x64   : > { %s2125_s27 = sshll.u32 %s452_s4, 3  ;;  %2219 = vmatprep.subr.bf16.mxu1 %v2711_v0  ;;  %2235 = vmatprep.subr.bf16.mxu0 %v2711_v0  ;;  %v2717_v26 = vmov 1934713408   ;;  %vm1135_vm3 = vcmask 64512   ;;  %vm1375_vm4 = vcmask 1043456   ;;  %vm1891_vm5 = vcmask 523264  }
  0x65   : > { %s454_s19 = scalar_lea.vmem %s3169_s0, %s2125_s27  ;;  %s458_s22 = scalar_lea.vmem %s3170_s1, %s2125_s27  ;;  %v647_v27 = vunpack.c.l.s4 %v2717_v26  ;;  %v616_v28 = vunpack.c.0.s8 %v615_v24 }
  0x66   : > { %v474_v4 = vld [vmem:[%s454_s19] sm:$0xff]  ;;  %s448_s12 = sand.u32 1, %s2684_s14   ;;  %s2718_s24 = smov [#allocation13]  }
  0x67   : > { %v475_v5 = vld [vmem:[%s458_s22] sm:$0xff]  ;;  %2220 = vmatpush3.bf16.msra.mxu1 %v2451_v2  ;;  %2236 = vmatpush3.bf16.msra.mxu0 %v2453_v7  ;;  %v648_v32 = vunpack.c.0.s8 %v647_v27  ;;  %v2957_v33 = vsub.s32 %v616_v28, %v618_v29  ;;  %s2124_s17 = sshll.u32 %s448_s12, 3  ;;  %s1961_s11 = scalar_lea.sflag [#allocation6], %s448_s12 }
  0x68   : > { %v2930_v6 = vadd.f32 %v475_v5, %v474_v4  ;;  %2225 = vmatprep.subr.bf16.mxu1 %v2711_v0  ;;  %2247 = vmatprep.subr.bf16.mxu0 %v2711_v0  ;;  %s2616_s29 = sshll.u32 %s2718_s24, 4  ;;  %s2617_s29 = int_to_ptr.vmem [resolvable:$false] %s2616_s29 }
  0x69   : > { %v2959_v40 = vsub.s32 %v648_v32, %v618_v29 }
  0x6a   : > { %v477_v8 = vpack.c.bf16 %v2930_v6, %v2930_v6 }
  0x6c   : > { %2222 = vmatmul.mubr.msk.bf16.vlgmr.msra.gmra.mxu1 %vm498_vm1, %v477_v8  ;;  %2238 = vmatmul.mubr.msk.bf16.vlgmr.msra.gmra.mxu0 %vm498_vm1, %v477_v8 }
  0x6d   : > { %2229 = vmatprep.mubr.msk.bf16.mxu1 %vm2712_vm0, %v2711_v0  ;;  %2249 = vmatprep.mubr.msk.bf16.mxu0 %vm2712_vm0, %v2711_v0 }
  0x6e   : > { %2226 = vmatpush3.bf16.msra.mxu1 %v2454_v21 }
  0x6f   : > { %2227 = vmatprep.subr.bf16.mxu1 %v2711_v0 }
  0x72   : > { %2228 = vmatpush3.bf16.msra.mxu1 %v2455_v22 }
  0x73   : > { %2241 = vmatprep.subr.bf16.mxu1 %v2711_v0 }
  0x75   : > { %2230 = vmatmul.mubr.msk.bf16.vlgmr.msra.gmra.mxu1 %vm498_vm1, %v477_v8 }
  0x76   : > { %2243 = vmatprep.mubr.msk.bf16.mxu1 %vm2712_vm0, %v2711_v0 }
 0x12c   : > { %v536_v10 = vpop.f32.mrf.mxu1  ;;  %v975_v14 = vpop.f32.mrf.mxu0 }
 0x12d   : > { %v537_v12 = vadd.f32 %v2127_v9, %v536_v10  ;;  %v976_v15 = vadd.f32 %v2139_v11, %v975_v14 }
 0x12e   : > { %v2223_v13 = vpop.f32.mrf.mxu1  ;;  %v2239_v17 = vpop.f32.mrf.mxu0 }
 0x12f   : > { %609 = vrot.lane.b32.xlu1 %v537_v12, %s2713_s26  ;;  %603 = vrot.lane.b32.xlu0 %v537_v12, %s2714_s20 }
 0x130   : > { %v539_v16 = vpop.f32.mrf.mxu1  ;;  %v978_v19 = vpop.f32.mrf.mxu0 }
 0x132   : > { %v2224_v18 = vpop.f32.mrf.mxu1  ;;  %v2240_v20 = vpop.f32.mrf.mxu0 }
 0x133   : > { %606 = vrot.lane.b32.xlu0 %v537_v12, %s2715_s15  ;;  %982 = vrot.lane.b32.xlu1 %v976_v15, %s2714_s20 }
 0x137   : > { %985 = vrot.lane.b32.xlu0 %v976_v15, %s2715_s15  ;;  %988 = vrot.lane.b32.xlu1 %v976_v15, %s2713_s26 }
 0x1a1   : > { %v610_v30 = vpop.permute.xlu1 %609  ;;  %v604_v31 = vpop.permute.xlu0 %603 }
 0x1a2   : > { %v628_v34 = vcombine.low %v604_v31, %v610_v30  ;;  %v629_v35 = vcombine.high %v604_v31, %v610_v30 }
 0x1a4   : > { %v636_v41 = vrot.slane %v628_v34, %v2957_v33  ;;  %v643_v42 = vrot.slane %v629_v35, %v2957_v33 }
 0x1a5   : > { %v607_v36 = vpop.permute.xlu0 %606  ;;  %v983_v37 = vpop.permute.xlu1 %982 }
 0x1a6   : > { %v612_v38 = vcombine.low %v537_v12, %v607_v36  ;;  %v613_v39 = vcombine.high %v537_v12, %v607_v36 }
 0x1a8   : > { %v620_v43 = vrot.slane %v612_v38, %v2957_v33  ;;  %v627_v44 = vrot.slane %v613_v39, %v2957_v33 }
 0x1a9   : > { %v986_v45 = vpop.permute.xlu0 %985  ;;  %v989_v46 = vpop.permute.xlu1 %988 }
 0x1aa   : > { %v644_v47 = vcombine.low %v620_v43, %v636_v41  ;;  %v645_v48 = vcombine.high %v620_v43, %v636_v41  ;;  %v660_v49 = vcombine.low %v627_v44, %v643_v42  ;;  %v661_v50 = vcombine.high %v627_v44, %v643_v42 }
 0x1ab   : > { %v991_v51 = vcombine.low %v976_v15, %v986_v45  ;;  %v992_v52 = vcombine.high %v976_v15, %v986_v45  ;;  %v1007_v53 = vcombine.low %v983_v37, %v989_v46  ;;  %v1008_v54 = vcombine.high %v983_v37, %v989_v46 }
 0x1ac   : > { %v652_v55 = vrot.slane %v644_v47, %v2959_v40  ;;  %v659_v56 = vrot.slane %v645_v48, %v2959_v40  ;;  %v668_v57 = vrot.slane %v660_v49, %v2959_v40  ;;  %v675_v58 = vrot.slane %v661_v50, %v2959_v40 }
 0x1ad   : > { %v999_v59 = vrot.slane %v991_v51, %v2957_v33  ;;  %v1006_v60 = vrot.slane %v992_v52, %v2957_v33  ;;  %v1015_v61 = vrot.slane %v1007_v53, %v2957_v33  ;;  %v1022_v62 = vrot.slane %v1008_v54, %v2957_v33 }
 0x1ae   : > { %v680_v63 = vcombine.low %v652_v55, %v659_v56  ;;  %v2135_v1 = vcombine.high %v652_v55, %v659_v56  ;;  %v696_v2 = vcombine.low %v668_v57, %v675_v58  ;;  %v2136_v3 = vcombine.high %v668_v57, %v675_v58 }
 0x1af   : > { %v1023_v4 = vcombine.low %v999_v59, %v1015_v61  ;;  %v1024_v5 = vcombine.high %v999_v59, %v1015_v61  ;;  %v1039_v7 = vcombine.low %v1006_v60, %v1022_v62  ;;  %v1040_v8 = vcombine.high %v1006_v60, %v1022_v62 }
 0x1b0   : > { %v687_v9 = vrot.slane %v680_v63, %v2957_v33  ;;  %v695_v10 = vrot.slane %v2135_v1, %v2957_v33  ;;  %v703_v11 = vrot.slane %v696_v2, %v2957_v33  ;;  %v711_v12 = vrot.slane %v2136_v3, %v2957_v33 }
 0x1b1   : > { %v1031_v13 = vrot.slane %v1023_v4, %v2959_v40  ;;  %v1038_v14 = vrot.slane %v1024_v5, %v2959_v40  ;;  %v1047_v15 = vrot.slane %v1039_v7, %v2959_v40  ;;  %v1054_v16 = vrot.slane %v1040_v8, %v2959_v40  ;;  %v596_v4 = vpop.f32.mrf.mxu1 }
 0x1b2   : > { %v712_v17 = vcombine.low %v687_v9, %v695_v10  ;;  %v713_v18 = vcombine.high %v687_v9, %v695_v10  ;;  %v728_v19 = vcombine.low %v703_v11, %v711_v12  ;;  %v729_v20 = vcombine.high %v703_v11, %v711_v12 }
 0x1b3   : > { %v1059_v21 = vcombine.low %v1031_v13, %v1038_v14  ;;  %v2143_v22 = vcombine.high %v1031_v13, %v1038_v14  ;;  %v1075_v23 = vcombine.low %v1047_v15, %v1054_v16  ;;  %v2144_v24 = vcombine.high %v1047_v15, %v1054_v16  ;;  %v2231_v5 = vpop.f32.mrf.mxu1 }
 0x1b4   : > { %v720_v25 = vrot.slane %v712_v17, %v2959_v40  ;;  %v727_v26 = vrot.slane %v713_v18, %v2959_v40  ;;  %v736_v27 = vrot.slane %v728_v19, %v2959_v40  ;;  %v743_v28 = vrot.slane %v729_v20, %v2959_v40 }
 0x1b5   : > { %v1066_v34 = vrot.slane %v1059_v21, %v2957_v33  ;;  %v1074_v35 = vrot.slane %v2143_v22, %v2957_v33  ;;  %v1082_v36 = vrot.slane %v1075_v23, %v2957_v33  ;;  %v1090_v37 = vrot.slane %v2144_v24, %v2957_v33  ;;  %v599_v7 = vpop.f32.mrf.mxu1 }
 0x1b6   : > { %v744_v29 = vcombine.low %v720_v25, %v736_v27  ;;  %v745_v30 = vcombine.high %v720_v25, %v736_v27  ;;  %v746_v31 = vcombine.low %v727_v26, %v743_v28  ;;  %v747_v32 = vcombine.high %v727_v26, %v743_v28  ;;  %v2131_v27 = vld [vmem:[#allocation12 + $0x2] ss:$0 sm:$0xff] }
 0x1b7   : > { %v1091_v43 = vcombine.low %v1066_v34, %v1074_v35  ;;  %v1107_v44 = vcombine.low %v1082_v36, %v1090_v37  ;;  %v1092_v51 = vcombine.high %v1066_v34, %v1074_v35  ;;  %v1108_v52 = vcombine.high %v1082_v36, %v1090_v37  ;;  %v2232_v8 = vpop.f32.mrf.mxu1 }
 0x1b8   : > { %v748_v38 = vpack.c.bf16 %v744_v29, %v744_v29  ;;  %v749_v39 = vpack.c.bf16 %v745_v30, %v745_v30  ;;  %v750_v41 = vpack.c.bf16 %v746_v31, %v746_v31  ;;  %v751_v42 = vpack.c.bf16 %v747_v32, %v747_v32 }
 0x1b9   : > { %v1099_v45 = vrot.slane %v1091_v43, %v2959_v40  ;;  %v1115_v46 = vrot.slane %v1107_v44, %v2959_v40  ;;  %v1106_v59 = vrot.slane %v1092_v51, %v2959_v40  ;;  %v1122_v60 = vrot.slane %v1108_v52, %v2959_v40 }
 0x1ba   : > { %753 = vst.msk [vmem:[#allocation2] sm:$0xf] %vm752_vm2, %v748_v38  ;;  %754 = vst.msk [vmem:[#allocation2 + $0x4] sm:$0xf] %vm752_vm2, %v749_v39  ;;  %v597_v30 = vadd.f32 %v2131_v27, %v596_v4 }
 0x1bb   : > { %755 = vst.msk [vmem:[#allocation2 + $0x8] sm:$0xf] %vm752_vm2, %v750_v41  ;;  %756 = vst.msk [vmem:[#allocation2 + $0xc] sm:$0xf] %vm752_vm2, %v751_v42  ;;  %v1123_v53 = vcombine.low %v1099_v45, %v1115_v46  ;;  %v1124_v54 = vcombine.high %v1099_v45, %v1115_v46  ;;  %v1125_v63 = vcombine.low %v1106_v59, %v1122_v60 }
 0x1bc   : > { %v1126_v1 = vcombine.high %v1106_v59, %v1122_v60 }
 0x1bd   : > { %v1127_v57 = vpack.c.bf16 %v1123_v53, %v1123_v53  ;;  %v1128_v58 = vpack.c.bf16 %v1124_v54, %v1124_v54  ;;  %v1129_v2 = vpack.c.bf16 %v1125_v63, %v1125_v63 }
 0x1be   : > { %v1130_v3 = vpack.c.bf16 %v1126_v1, %v1126_v1 }
 0x1c1   : > { %v1131_v47 = vld [vmem:[#allocation2] sm:$0xf]  ;;  %v1132_v48 = vld [vmem:[#allocation2 + $0x4] sm:$0xf] }
 0x1c2   : > { %v1140_v49 = vsel %vm1135_vm3, %v1131_v47, 0  ;;  %v1186_v50 = vsel %vm1135_vm3, %v1132_v48, 0  ;;  %v1133_v55 = vld [vmem:[#allocation2 + $0x8] sm:$0xf]  ;;  %v1134_v56 = vld [vmem:[#allocation2 + $0xc] sm:$0xf] }
 0x1c3   : > { %2242 = vmatpush3.bf16.xpose.msra.mxu1 %v1140_v49  ;;  %2248 = vmatpush3.bf16.xpose.msra.mxu0 %v1186_v50  ;;  %v1232_v61 = vsel %vm1135_vm3, %v1133_v55, 0  ;;  %v1278_v62 = vsel %vm1135_vm3, %v1134_v56, 0 }
 0x1c4   : > { %2253 = vmatprep.subr.bf16.mxu1 %v2711_v0  ;;  %2259 = vmatprep.subr.bf16.mxu0 %v2711_v0 }
 0x1ca   : > { %2244 = vmatmul.mubr.msk.bf16.vlgmr.msra.gmra.mxu1 %vm1135_vm3, %v1127_v57  ;;  %2250 = vmatmul.mubr.msk.bf16.vlgmr.msra.gmra.mxu0 %vm1135_vm3, %v1128_v58 }
 0x1cb   : > { %2254 = vmatpush3.bf16.xpose.msra.mxu1 %v1232_v61  ;;  %2260 = vmatpush3.bf16.xpose.msra.mxu0 %v1278_v62 }
 0x1cc   : > { %2255 = vmatprep.mubr.msk.bf16.mxu1 %vm2712_vm0, %v2711_v0  ;;  %2261 = vmatprep.mubr.msk.bf16.mxu0 %vm2712_vm0, %v2711_v0 }
 0x1cd   : > { %2265 = vmatprep.subr.bf16.mxu1 %v2711_v0  ;;  %2271 = vmatprep.subr.bf16.mxu0 %v2711_v0 }
 0x1d2   : > { %2256 = vmatmul.mubr.msk.bf16.vlgmr.msra.gmra.mxu1 %vm1135_vm3, %v1129_v2  ;;  %2262 = vmatmul.mubr.msk.bf16.vlgmr.msra.gmra.mxu0 %vm1135_vm3, %v1130_v3 }
 0x1d3   : > { %2267 = vmatprep.mubr.msk.bf16.mxu1 %vm2712_vm0, %v2711_v0  ;;  %2273 = vmatprep.mubr.msk.bf16.mxu0 %vm2712_vm0, %v2711_v0 }
 0x28a   : > { %v1176_v9 = vpop.f32.mrf.mxu1  ;;  %v1222_v10 = vpop.f32.mrf.mxu0 }
 0x28b   : > { %v1323_v11 = vsel %vm1135_vm3, %v1222_v10, -inf  ;;  %v1320_v12 = vsel %vm1135_vm3, %v1176_v9, -inf }
 0x28c   : > { %1324 = vmax.xlane.f32.xlu1 %v1323_v11  ;;  %v2251_v13 = vpop.f32.mrf.mxu0  ;;  %1321 = vmax.xlane.f32.xlu0 %v1320_v12  ;;  %v2245_v14 = vpop.f32.mrf.mxu1 }
 0x28e   : > { %v1179_v15 = vpop.f32.mrf.mxu1  ;;  %v1225_v16 = vpop.f32.mrf.mxu0 }
 0x290   : > { %v2246_v17 = vpop.f32.mrf.mxu1  ;;  %v2252_v18 = vpop.f32.mrf.mxu0 }
 0x292   : > { %v1268_v19 = vpop.f32.mrf.mxu1  ;;  %v1314_v20 = vpop.f32.mrf.mxu0 }
 0x293   : > { %v1326_v21 = vsel %vm1135_vm3, %v1268_v19, -inf  ;;  %v1329_v26 = vsel %vm1135_vm3, %v1314_v20, -inf }
 0x294   : > { %v2263_v22 = vpop.f32.mrf.mxu0  ;;  %1327 = vmax.xlane.f32.xlu0 %v1326_v21  ;;  %v2257_v23 = vpop.f32.mrf.mxu1 }
 0x296   : > { %v1271_v24 = vpop.f32.mrf.mxu1  ;;  %v1317_v25 = vpop.f32.mrf.mxu0 }
 0x298   : > { %v2264_v28 = vpop.f32.mrf.mxu0  ;;  %1330 = vmax.xlane.f32.xlu0 %v1329_v26  ;;  %v2258_v29 = vpop.f32.mrf.mxu1 }
 0x29d   : > { %758 = vrot.lane.b32.xlu1 %v597_v30, %s2714_s20  ;;  %s450_s20 = scalar_lea.vmem [#allocation13], %s2124_s17 }
 0x2a1   : > { %764 = vrot.lane.b32.xlu1 %v597_v30, %s2713_s26  ;;  %s2173_s26 = sshll.u32 %s2692_s16, 7  ;;  %s2618_s16 = scalar_lea.vmem %s2617_s29, 256 }
 0x2a2   : > { %s1973_s28 = scalar_lea.hbm %s3179_s10, %s2173_s26 }
 0x2ae   : > { %761 = vrot.lane.b32.xlu0 %v597_v30, %s2715_s15  ;;  %s1975_s15 = sshll.u32 %s450_s20, 4  ;;  %s1976_s15 = int_to_ptr.vmem [resolvable:$true] %s1975_s15 }
 0x2af   : > { %s2612_s19 = scalar_lea.vmem %s1976_s15, 128  ;;  %p2619_p1 = scmp.lt.s32.totalorder %s1976_s15, %s2617_s29 }
 0x2b0   : > { %p2613_p11 = scmp.ne.s32.totalorder %s1976_s15, %s2612_s19  ;;  %p2620_p5 = scmp.lt.s32.totalorder %s2618_s16, %s2612_s19 }
 0x2b2   : > { %p2614_p13 = pnand %p2613_p11, %p2814_p4  ;;  %p2621_p3 = por %p2620_p5, %p2619_p1 }
 0x2b4   : > { %p2615_p0 = pneg %p2614_p13 }
 0x2b6   : > { %p2622_p6 = pnand %p2621_p3, %p2615_p0 }
 0x315   : > { %v1325_v31 = vpop.xlane.xlu1 %1324  ;;  %v1322_v32 = vpop.xlane.xlu0 %1321 }
 0x316   : > { %v1333_v34 = vsub.f32 %v1222_v10, %v1325_v31  ;;  %v1332_v35 = vsub.f32 %v1176_v9, %v1322_v32 }
 0x318   : > { %v1338_v36 = vmul.f32 1.442695, %v1333_v34  ;;  %v1336_v37 = vmul.f32 1.442695, %v1332_v35 }
 0x319   : > { %v759_v38 = vpop.permute.xlu1 %758 }
 0x31a   : > { %2462 = vpow2.f32 %v1338_v36 }
 0x31b   : > { %2464 = vpow2.f32 %v1336_v37 }
 0x31d   : > { %v1328_v39 = vpop.xlane.xlu0 %1327  ;;  %v765_v42 = vpop.permute.xlu1 %764 }
 0x31e   : > { %v1334_v41 = vsub.f32 %v1268_v19, %v1328_v39  ;;  %v783_v46 = vcombine.low %v759_v38, %v765_v42  ;;  %v784_v47 = vcombine.high %v759_v38, %v765_v42 }
 0x320   : > { %v1340_v43 = vmul.f32 1.442695, %v1334_v41  ;;  %v791_v53 = vrot.slane %v783_v46, %v2957_v33  ;;  %v798_v55 = vrot.slane %v784_v47, %v2957_v33 }
 0x321   : > { %v1331_v44 = vpop.xlane.xlu0 %1330 }
 0x322   : > { %2466 = vpow2.f32 %v1340_v43  ;;  %v1335_v45 = vsub.f32 %v1314_v20, %v1331_v44 }
 0x324   : > { %v1342_v48 = vmul.f32 1.442695, %v1335_v45 }
 0x325   : > { %v762_v49 = vpop.permute.xlu0 %761 }
 0x326   : > { %2468 = vpow2.f32 %v1342_v48  ;;  %v767_v50 = vcombine.low %v597_v30, %v762_v49  ;;  %v768_v51 = vcombine.high %v597_v30, %v762_v49 }
 0x327   : > { %v3024_v52 = vpop.eup %2462 }
 0x328   : > { %v3027_v54 = vpop.eup %2464  ;;  %v775_v56 = vrot.slane %v767_v50, %v2957_v33  ;;  %v782_v57 = vrot.slane %v768_v51, %v2957_v33  ;;  %v1347_v58 = vsel %vm1135_vm3, %v3024_v52, 0.0 }
 0x329   : > { %v1344_v59 = vsel %vm1135_vm3, %v3027_v54, 0.0  ;;  %1348 = vadd.xlane.f32.xlu0 %v1347_v58 }
 0x32a   : > { %v799_v60 = vcombine.low %v775_v56, %v791_v53  ;;  %v800_v61 = vcombine.high %v775_v56, %v791_v53  ;;  %v815_v62 = vcombine.low %v782_v57, %v798_v55  ;;  %v816_v63 = vcombine.high %v782_v57, %v798_v55  ;;  %1345 = vadd.xlane.f32.xlu1 %v1344_v59  ;;  %v1561_v53 = vld [vmem:[#allocation9] sm:$0xf] }
 0x32b   : > { %v1569_v56 = vsel %vm1375_vm4, %v1561_v53, 0 }
 0x32c   : > { %v807_v1 = vrot.slane %v799_v60, %v2959_v40  ;;  %v814_v2 = vrot.slane %v800_v61, %v2959_v40  ;;  %v823_v3 = vrot.slane %v815_v62, %v2959_v40  ;;  %v830_v4 = vrot.slane %v816_v63, %v2959_v40  ;;  %v1562_v60 = vld [vmem:[#allocation9 + $0x4] sm:$0xf]  ;;  %v1564_v62 = vld [vmem:[#allocation9 + $0xc] sm:$0xf]  ;;  %v1563_v63 = vld [vmem:[#allocation9 + $0x8] sm:$0xf] }
 0x32d   : > { %v1615_v61 = vsel %vm1375_vm4, %v1562_v60, 0 }
 0x32e   : > { %v835_v5 = vcombine.low %v807_v1, %v814_v2  ;;  %v2137_v7 = vcombine.high %v807_v1, %v814_v2  ;;  %v851_v8 = vcombine.low %v823_v3, %v830_v4  ;;  %v2138_v9 = vcombine.high %v823_v3, %v830_v4 }
 0x32f   : > { %v3040_v10 = vpop.eup %2466  ;;  %v1707_v4 = vsel %vm1375_vm4, %v1564_v62, 0 }
 0x330   : > { %v842_v11 = vrot.slane %v835_v5, %v2957_v33  ;;  %v850_v12 = vrot.slane %v2137_v7, %v2957_v33  ;;  %v858_v13 = vrot.slane %v851_v8, %v2957_v33  ;;  %v866_v14 = vrot.slane %v2138_v9, %v2957_v33 }
 0x331   : > { %v1350_v15 = vsel %vm1135_vm3, %v3040_v10, 0.0  ;;  %v1661_v8 = vsel %vm1375_vm4, %v1563_v63, 0  ;;  %v2158_v63 = vld [vmem:[#allocation12 + $0x5] ss:$0 sm:$0xff] }
 0x332   : > { %v867_v16 = vcombine.low %v842_v11, %v850_v12  ;;  %v868_v17 = vcombine.high %v842_v11, %v850_v12  ;;  %v883_v18 = vcombine.low %v858_v13, %v866_v14  ;;  %v884_v19 = vcombine.high %v858_v13, %v866_v14  ;;  %1351 = vadd.xlane.f32.xlu0 %v1350_v15 }
 0x333   : > { %v2469_v20 = vpop.eup %2468 }
 0x334   : > { %v875_v21 = vrot.slane %v867_v16, %v2959_v40  ;;  %v882_v22 = vrot.slane %v868_v17, %v2959_v40  ;;  %v891_v23 = vrot.slane %v883_v18, %v2959_v40  ;;  %v898_v24 = vrot.slane %v884_v19, %v2959_v40 }
 0x335   : > { %v1353_v25 = vsel %vm1135_vm3, %v2469_v20, 0.0 }
 0x336   : > { %v899_v33 = vcombine.low %v875_v21, %v891_v23  ;;  %v900_v26 = vcombine.high %v875_v21, %v891_v23  ;;  %v901_v27 = vcombine.low %v882_v22, %v898_v24  ;;  %v902_v28 = vcombine.high %v882_v22, %v898_v24  ;;  %1354 = vadd.xlane.f32.xlu1 %v1353_v25 }
 0x338   : > { %v903_v29 = vpack.c.bf16 %v899_v33, %v899_v33  ;;  %v904_v30 = vpack.c.bf16 %v900_v26, %v900_v26  ;;  %v905_v31 = vpack.c.bf16 %v901_v27, %v901_v27  ;;  %v906_v32 = vpack.c.bf16 %v902_v28, %v902_v28 }
 0x33a   : > { %907 = vst.msk [vmem:[#allocation3] sm:$0xf] %vm752_vm2, %v903_v29  ;;  %908 = vst.msk [vmem:[#allocation3 + $0x4] sm:$0xf] %vm752_vm2, %v904_v30 }
 0x33b   : > { %909 = vst.msk [vmem:[#allocation3 + $0x8] sm:$0xf] %vm752_vm2, %v905_v31  ;;  %910 = vst.msk [vmem:[#allocation3 + $0xc] sm:$0xf] %vm752_vm2, %v906_v32 }
 0x341   : > { %v1368_v40 = vld [vmem:[#allocation3] sm:$0xf]  ;;  %v1369_v34 = vld [vmem:[#allocation3 + $0x4] sm:$0xf] }
 0x342   : > { %v1377_v35 = vsel %vm1375_vm4, %v1368_v40, 0  ;;  %v1423_v36 = vsel %vm1375_vm4, %v1369_v34, 0  ;;  %v1371_v46 = vld [vmem:[#allocation3 + $0xc] sm:$0xf]  ;;  %v1370_v48 = vld [vmem:[#allocation3 + $0x8] sm:$0xf] }
 0x343   : > { %2266 = vmatpush3.bf16.msra.mxu1 %v1377_v35  ;;  %2272 = vmatpush3.bf16.msra.mxu0 %v1423_v36  ;;  %v1515_v50 = vsel %vm1375_vm4, %v1371_v46, 0  ;;  %v1469_v51 = vsel %vm1375_vm4, %v1370_v48, 0 }
 0x344   : > { %2277 = vmatprep.subr.bf16.mxu1 %v2711_v0  ;;  %2283 = vmatprep.subr.bf16.mxu0 %v2711_v0 }
 0x3b2   : > { %v1349_v37 = vpop.xlane.xlu0 %1348 }
 0x3b3   : > { %v1346_v38 = vpop.xlane.xlu1 %1345  ;;  %2470 = vrcp.f32 %v1349_v37 }
 0x3b4   : > { %2472 = vrcp.f32 %v1346_v38 }
 0x3bb   : > { %v1352_v39 = vpop.xlane.xlu0 %1351 }
 0x3bc   : > { %2474 = vrcp.f32 %v1352_v39 }
 0x3bf   : > { %v1355_v41 = vpop.xlane.xlu1 %1354 }
 0x3c0   : > { %v2471_v42 = vpop.eup %2470  ;;  %2476 = vrcp.f32 %v1355_v41  ;;  %v2157_v41 = vld [vmem:[#allocation12 + $0x3] ss:$0 sm:$0xff] }
 0x3c1   : > { %v2473_v43 = vpop.eup %2472  ;;  %v1361_v44 = vmul.f32 %v2471_v42, %v3024_v52 }
 0x3c2   : > { %v1360_v45 = vmul.f32 %v2473_v43, %v3027_v54 }
 0x3c3   : > { %v1365_v47 = vpack.c.bf16 %v1361_v44, %v1361_v44 }
 0x3c4   : > { %v1364_v49 = vpack.c.bf16 %v1360_v45, %v1360_v45 }
 0x3c5   : > { %2274 = vmatmul.mubr.msk.bf16.vlgmr.msra.gmra.mxu0 %vm1135_vm3, %v1365_v47 }
 0x3c6   : > { %2268 = vmatmul.mubr.msk.bf16.vlgmr.msra.gmra.mxu1 %vm1135_vm3, %v1364_v49  ;;  %2284 = vmatpush3.bf16.msra.mxu0 %v1515_v50 }
 0x3c7   : > { %2278 = vmatpush3.bf16.msra.mxu1 %v1469_v51  ;;  %2279 = vmatprep.mubr.msk.bf16.mxu1 %vm2712_vm0, %v2711_v0 }
 0x3c8   : > { %2285 = vmatprep.mubr.msk.bf16.mxu0 %vm2712_vm0, %v2711_v0  ;;  %2289 = vmatprep.subr.bf16.mxu1 %v2711_v0 }
 0x3c9   : > { %v2475_v52 = vpop.eup %2474  ;;  %2295 = vmatprep.subr.bf16.mxu0 %v2711_v0 }
 0x3ca   : > { %v1362_v54 = vmul.f32 %v2475_v52, %v3040_v10 }
 0x3cc   : > { %v1366_v55 = vpack.c.bf16 %v1362_v54, %v1362_v54 }
 0x3cd   : > { %v2477_v57 = vpop.eup %2476 }
 0x3ce   : > { %2280 = vmatmul.mubr.msk.bf16.vlgmr.msra.gmra.mxu1 %vm1135_vm3, %v1366_v55  ;;  %v1363_v58 = vmul.f32 %v2477_v57, %v2469_v20  ;;  %v2457_v57 = vld [vmem:[#allocation10] sm:$0xff]  }
 0x3cf   : > { %2290 = vmatpush3.bf16.msra.mxu1 %v1569_v56  ;;  %2291 = vmatprep.mubr.msk.bf16.mxu1 %vm2712_vm0, %v2711_v0  ;;  %v2456_v56 = vld [vmem:[#allocation10 + $0x8] sm:$0xff]  }
 0x3d0   : > { %v1367_v59 = vpack.c.bf16 %v1363_v58, %v1363_v58  ;;  %2301 = vmatprep.subr.bf16.mxu1 %v2711_v0  ;;  %v2459_v58 = vld [vmem:[%s3176_s7 + $0x10] sm:$0xff]  }
 0x3d2   : > { %2286 = vmatmul.mubr.msk.bf16.vlgmr.msra.gmra.mxu0 %vm1135_vm3, %v1367_v59 }
 0x3d3   : > { %2297 = vmatprep.mubr.msk.bf16.mxu0 %vm2712_vm0, %v2711_v0  ;;  %2296 = vmatpush3.bf16.msra.mxu0 %v1615_v61 }
 0x3d4   : > { %2307 = vmatprep.subr.bf16.mxu0 %v2711_v0 }
 0x485   : > { %v1459_v1 = vpop.f32.mrf.mxu0 }
 0x486   : > { %v1413_v2 = vpop.f32.mrf.mxu1  ;;  %v1558_v3 = vpack.c.bf16 %v1459_v1, %v1459_v1 }
 0x487   : > { %v1557_v5 = vpack.c.bf16 %v1413_v2, %v1413_v2  ;;  %v2275_v7 = vpop.f32.mrf.mxu0  ;;  %v2159_v2 = vld [vmem:[#allocation12 + $0x6] ss:$0 sm:$0xff] }
 0x488   : > { %v2269_v9 = vpop.f32.mrf.mxu1  ;;  %2298 = vmatmul.mubr.msk.bf16.vlgmr.msra.gmra.mxu0 %vm1135_vm3, %v1558_v3  ;;  %v2460_v7 = vld [vmem:[%s3176_s7 + $0x8] sm:$0xff]  }
 0x489   : > { %2292 = vmatmul.mubr.msk.bf16.vlgmr.msra.gmra.mxu1 %vm1135_vm3, %v1557_v5  ;;  %v1462_v10 = vpop.f32.mrf.mxu0  ;;  %2308 = vmatpush3.bf16.msra.mxu0 %v1707_v4  ;;  %v2160_v9 = vld [vmem:[%s3178_s9] ss:$0 sm:$0xff] }
 0x48a   : > { %v1416_v11 = vpop.f32.mrf.mxu1  ;;  %2302 = vmatpush3.bf16.msra.mxu1 %v1661_v8  ;;  %2303 = vmatprep.mubr.msk.bf16.mxu1 %vm2712_vm0, %v2711_v0  ;;  %v2461_v8 = vld [vmem:[%s3176_s7] sm:$0xff]  }
 0x48b   : > { %v2276_v12 = vpop.f32.mrf.mxu0  ;;  %2309 = vmatprep.mubr.msk.bf16.mxu0 %vm2712_vm0, %v2711_v0  ;;  %2313 = vmatprep.subr.bf16.mxu1 %v2711_v0 }
 0x48c   : > { %v2270_v13 = vpop.f32.mrf.mxu1  ;;  %2321 = vmatprep.subr.bf16.mxu0 %v2711_v0 }
 0x48e   : > { %v1505_v14 = vpop.f32.mrf.mxu1 }
 0x48f   : > { %v1559_v15 = vpack.c.bf16 %v1505_v14, %v1505_v14 }
 0x490   : > { %v2281_v16 = vpop.f32.mrf.mxu1 }
 0x491   : > { %2304 = vmatmul.mubr.msk.bf16.vlgmr.msra.gmra.mxu1 %vm1135_vm3, %v1559_v15 }
 0x492   : > { %v1508_v17 = vpop.f32.mrf.mxu1  ;;  %v1551_v18 = vpop.f32.mrf.mxu0  ;;  %2317 = vmatprep.mubr.msk.bf16.mxu1 %vm2712_vm0, %v2711_v0  ;;  %2314 = vmatpush3.bf16.msra.mxu1 %v2456_v56 }
 0x493   : > { %v1560_v19 = vpack.c.bf16 %v1551_v18, %v1551_v18  ;;  %2315 = vmatprep.subr.bf16.mxu1 %v2711_v0  ;;  %v2164_v17 = vld [vmem:[#allocation12 + $0x4] ss:$0 sm:$0xff] }
 0x494   : > { %v2282_v20 = vpop.f32.mrf.mxu1  ;;  %v2287_v21 = vpop.f32.mrf.mxu0 }
 0x495   : > { %2310 = vmatmul.mubr.msk.bf16.vlgmr.msra.gmra.mxu0 %vm1135_vm3, %v1560_v19 }
 0x496   : > { %v1554_v22 = vpop.f32.mrf.mxu0  ;;  %2329 = vmatprep.mubr.msk.bf16.mxu0 %vm2712_vm0, %v2711_v0  ;;  %2316 = vmatpush3.bf16.msra.mxu1 %v2457_v57 }
 0x498   : > { %v2288_v23 = vpop.f32.mrf.mxu0 }
 0x548   : > { %v1651_v24 = vpop.f32.mrf.mxu0 }
 0x549   : > { %v1605_v25 = vpop.f32.mrf.mxu1  ;;  %v1750_v32 = vsel %vm498_vm1, %v1651_v24, 0.0 }
 0x54a   : > { %v2299_v33 = vpop.f32.mrf.mxu0  ;;  %v1749_v31 = vsel %vm498_vm1, %v1605_v25, 0.0 }
 0x54b   : > { %v2293_v26 = vpop.f32.mrf.mxu1  ;;  %v1751_v35 = vadd.f32 %v1750_v32, %v1749_v31  ;;  %v2170_v32 = vld [vmem:[#allocation12 + $0x7] ss:$0 sm:$0xff] }
 0x54c   : > { %v1654_v27 = vpop.f32.mrf.mxu0 }
 0x54d   : > { %v1608_v28 = vpop.f32.mrf.mxu1 }
 0x54e   : > { %v2300_v29 = vpop.f32.mrf.mxu0 }
 0x54f   : > { %v2294_v30 = vpop.f32.mrf.mxu1 }
 0x551   : > { %v1697_v40 = vpop.f32.mrf.mxu1 }
 0x552   : > { %v1752_v34 = vsel %vm498_vm1, %v1697_v40, 0.0 }
 0x553   : > { %v2305_v36 = vpop.f32.mrf.mxu1  ;;  %v1753_v37 = vadd.f32 %v1752_v34, %v1751_v35  ;;  %v2171_v34 = vld [vmem:[#allocation12 + $0x8] ss:$0 sm:$0xff] }
 0x555   : > { %v1700_v38 = vpop.f32.mrf.mxu1  ;;  %v1743_v39 = vpop.f32.mrf.mxu0 }
 0x556   : > { %v1754_v42 = vsel %vm498_vm1, %v1743_v39, 0.0 }
 0x557   : > { %v1755_v43 = vadd.f32 %v1754_v42, %v1753_v37  ;;  %v2306_v44 = vpop.f32.mrf.mxu1  ;;  %v2311_v45 = vpop.f32.mrf.mxu0 }
 0x559   : > { %v1760_v46 = vadd.f32 %v2157_v41, %v1755_v43  ;;  %v1746_v47 = vpop.f32.mrf.mxu0 }
 0x55b   : > { %v2312_v48 = vpop.f32.mrf.mxu0  ;;  %v1761_v49 = vadd.f32 %v1760_v46, %v2930_v6  ;;  %v2458_v6 = vld [vmem:[%s3176_s7 + $0x18] sm:$0xff]  }
 0x55c   : > { %2322 = vmatpush3.bf16.msra.mxu0 %v2458_v6 }
 0x55d   : > { %v1762_v50 = vsel %vm498_vm1, %v1761_v49, 0.0  ;;  %2323 = vmatprep.subr.bf16.mxu0 %v2711_v0 }
 0x55e   : > { %1763 = vadd.xlane.f32.xlu0 %v1762_v50 }
 0x560   : > { %2324 = vmatpush3.bf16.msra.mxu0 %v2459_v58 }
 0x561   : > { %2325 = vmatprep.subr.bf16.mxu0 %v2711_v0 }
 0x564   : > { %2326 = vmatpush3.bf16.msra.mxu0 %v2460_v7 }
 0x565   : > { %2327 = vmatprep.subr.bf16.mxu0 %v2711_v0 }
 0x568   : > { %2328 = vmatpush3.bf16.msra.mxu0 %v2461_v8 }
 0x5e7   : > { %v1764_v51 = vpop.xlane.xlu0 %1763 }
 0x5e8   : > { %v1766_v52 = vmul.f32 0.03125, %v1764_v51 }
 0x5ea   : > { %v1767_v53 = vsub.f32 %v1761_v49, %v1766_v52 }
 0x5ec   : > { %v1768_v54 = vmul.f32 %v1767_v53, %v1767_v53 }
 0x5ee   : > { %v1769_v55 = vsel %vm498_vm1, %v1768_v54, 0.0 }
 0x5ef   : > { %1770 = vadd.xlane.f32.xlu1 %v1769_v55 }
 0x678   : > { %v1771_v59 = vpop.xlane.xlu1 %1770 }
 0x679   : > { %v1772_v60 = vmul.f32 0.03125, %v1771_v59 }
 0x67b   : > { %v1773_v61 = vadd.f32 1e-05, %v1772_v60 }
 0x67d   : > { %2478 = vrsqrt.f32 %v1773_v61 }
 0x68a   : > { %v2479_v62 = vpop.eup %2478 }
 0x68b   : > { %v1775_v1 = vmul.f32 %v2479_v62, %v1767_v53 }
 0x68d   : > { %v1780_v3 = vmul.f32 %v2158_v63, %v1775_v1 }
 0x68f   : > { %v1785_v4 = vadd.f32 %v2159_v2, %v1780_v3 }
 0x691   : > { %v1786_v5 = vpack.c.bf16 %v1785_v4, %v1785_v4 }
 0x693   : > { %2318 = vmatmul.mubr.msk.bf16.vlgmr.msra.gmra.mxu1 %vm498_vm1, %v1786_v5 }
 0x753   : > { %v1847_v10 = vpop.f32.mrf.mxu1 }
 0x754   : > { %v1848_v11 = vadd.f32 %v2160_v9, %v1847_v10 }
 0x755   : > { %v2319_v12 = vpop.f32.mrf.mxu1 }
 0x756   : > { %v1853_v13 = vmax.f32 %v1848_v11, 0.0 }
 0x757   : > { %v1850_v14 = vpop.f32.mrf.mxu1 }
 0x758   : > { %v1854_v15 = vpack.c.bf16 %v1853_v13, %v1853_v13 }
 0x759   : > { %v2320_v16 = vpop.f32.mrf.mxu1 }
 0x75a   : > { %2330 = vmatmul.mubr.msk.bf16.vlgmr.msra.gmra.mxu0 %vm1891_vm5, %v1854_v15 }
 0x81a   : > { %v1929_v0 = vpop.f32.mrf.mxu0 }
 0x81b   : > { %v1930_v18 = vadd.f32 %v2164_v17, %v1929_v0 }
 0x81c   : > { %v2331_v19 = vpop.f32.mrf.mxu0 }
 0x81d   : > { %v1935_v20 = vadd.f32 %v1930_v18, %v1785_v4 }
 0x81e   : > { %v1932_v21 = vpop.f32.mrf.mxu0 }
 0x81f   : > { %v1936_v22 = vsel %vm498_vm1, %v1935_v20, 0.0 }
 0x820   : > { %1937 = vadd.xlane.f32.xlu0 %v1936_v22  ;;  %v2332_v23 = vpop.f32.mrf.mxu0 }
 0x8a9   : > { %v1938_v24 = vpop.xlane.xlu0 %1937 }
 0x8aa   : > { %v1939_v25 = vmul.f32 0.03125, %v1938_v24 }
 0x8ac   : > { %v1940_v33 = vsub.f32 %v1935_v20, %v1939_v25 }
 0x8ae   : > { %v1941_v26 = vmul.f32 %v1940_v33, %v1940_v33 }
 0x8b0   : > { %v1942_v27 = vsel %vm498_vm1, %v1941_v26, 0.0 }
 0x8b1   : > { %1943 = vadd.xlane.f32.xlu1 %v1942_v27 }
 0x93a   : > { %v1944_v28 = vpop.xlane.xlu1 %1943 }
 0x93b   : > { %v1945_v29 = vmul.f32 0.03125, %v1944_v28 }
 0x93d   : > { %v1946_v30 = vadd.f32 1e-05, %v1945_v29 }
 0x93f   : > { %2480 = vrsqrt.f32 %v1946_v30 }
 0x94c   : > { %v2481_v31 = vpop.eup %2480 }
 0x94d   : > { %v1948_v40 = vmul.f32 %v2481_v31, %v1940_v33 }
 0x94f   : > { %v1953_v35 = vmul.f32 %v2170_v32, %v1948_v40 }
 0x951   : > { %v1958_v36 = vadd.f32 %v2171_v34, %v1953_v35 }
 0x953   : > { %1959 = vst.msk [vmem:[%s450_s20] sm:$0xff] %vm498_vm1, %v1958_v36 }
 0x954   : > { %2625 = shalt.err (!%p2622_p6)
}
 0x955   : > { %s2626_s22 = scalar_lea.hbm %s1973_s28, 128  ;;  %s2630_s12 = scalar_lea.hbm %s3179_s10, 256 }
 0x956   : > { %p2627_p8 = scmp.ne.s32.totalorder %s1973_s28, %s2626_s22  ;;  %p2631_p12 = scmp.lt.s32.totalorder %s1973_s28, %s3179_s10 }
 0x957   : > { %p2632_p2 = scmp.lt.s32.totalorder %s2630_s12, %s2626_s22 }
 0x958   : > { %p2628_p7 = pnand %p2627_p8, %p2814_p4 }
 0x959   : > { %p2633_p10 = por %p2632_p2, %p2631_p12 }
 0x95a   : > { %p2629_p9 = pneg %p2628_p7 }
 0x95c   : > { %p2634_p11 = pnand %p2633_p10, %p2629_p9 }
 0x95e   : > { %2637 = shalt.err (!%p2634_p11)
}
 0x95f   : > { %2353 = dma.vmem_to_hbm [thread:$0]  (%p2814_p4), %s1976_s15, 128, %s1973_s28, %s1961_s11  }
 0x960 PF: > { %p2385_p13 = scmp.ge.s32.totalorder %s2700_s18, 2  ;;  %s1987_s20 = sand.u32 1, %s2680_s13  }
 0x961   : > { %p3195_p0 = scmp.ne.s32.totalorder %s3188_s25, 0  ;;  %s1988_s4 = scalar_lea.sflag [#allocation6], %s1987_s20 }
 0x963   : > { %p2372_p1 = pnand %p2385_p13, %p3195_p0 }
 0x965   : > { %p2373_p5 = pneg %p2372_p1 }
 0x967   : > { %2675 = dma.done.wait (%p2373_p5), %s1988_s4, 128  }
 0x968   : > { %2677 = vsyncadd (%p2373_p5), %s1988_s4, 4294967168  ;;  %s26_s18 = sadd.s32 1, %s2700_s18   ;;  %s3196_s27 = sld [smem:[#allocation18_spill]] }
 0x969   : > { %p23_p3 = scmp.ge.s32.totalorder %s26_s18, 4   ;;  %s3197_s15 = sld [smem:[#allocation21_spill]] }
 0x96a   : > { %s3198_s16 = sld [smem:[#allocation19_spill]]  ;;  %s3200_s13 = smov %s2684_s14 }
 0x96b   : > { %s3199_s17 = sld [smem:[#allocation20_spill]]  ;;  %25 = sbr.rel (!%p23_p3) target bundleno = 9 (0x9), region = 125 }
 0x96e   : > { %s3201_s14 = smov %s3196_s27 }
 0x970   :  { %1993 = vsyncpa [#allocation5], 1 }
 0x971   :  { %1995 = vsyncpa [#allocation5 + $0x1], 1 }
 0x972   :  { %1996 = vsyncpa [#allocation8], 1 }
 0x973   :  { %1997 = vsyncpa [#allocation11], 1 }
 0x974   :  { %1998 = vsyncpa [#allocation6], 1 }
 0x975   :  { %2000 = vsyncpa [#allocation6 + $0x1], 1 }

</bundles_post_ra>
